<compile_context>
chip_gen: v7x
topology: tpu7x:2x2x1
jax: 0.10.0
libtpu: 0.0.40
codegen_flags: <defaults>
</compile_context>

<pallas_src>
import jax
import jax.numpy as jnp
from jax.experimental import pallas as pl
from jax.experimental.pallas import tpu as pltpu


# ----------------------------------------------------------------------------- kernel
def _make_kernel(num_layers: int, hidden: int, seq_len: int, batch: int):
    H, T, B = hidden, seq_len, batch

    def kernel(x_ref, ln_g_ref, ln_b_ref, *rest):
        lstm_refs = rest[:3 * num_layers]
        (fc1_w_ref, fc1_b_ref,
         fc2_w_ref, fc2_b_ref,
         fco_w_ref, fco_b_ref,
         out_ref, slab_ref) = rest[3 * num_layers:]

        # ---------------- LayerNorm over feature dim (eps = 1e-5, like nn.LayerNorm) ----
        x = x_ref[...]                                   # (T*B, F), time-major rows
        mean = jnp.mean(x, axis=-1, keepdims=True)
        var = jnp.mean((x - mean) ** 2, axis=-1, keepdims=True)
        seq = (x - mean) * jax.lax.rsqrt(var + 1e-5) * ln_g_ref[...] + ln_b_ref[...]

        # ---------------- stacked LSTM (PyTorch gate order: i, f, g, o) ------------------
        h = jnp.zeros((B, H), jnp.float32)
        for l in range(num_layers):
            wih = lstm_refs[3 * l + 0][...]              # (in_dim, 4H)   pre-transposed
            whh = lstm_refs[3 * l + 1][...]              # (H, 4H)        pre-transposed
            b = lstm_refs[3 * l + 2][...]                # (1, 4H) = b_ih + b_hh (folded)

            # Whole-sequence input projection: one batched MXU matmul, bias added once.
            proj = jnp.dot(seq, wih, preferred_element_type=jnp.float32) + b   # (T*B, 4H)

            h = jnp.zeros((B, H), jnp.float32)
            c = jnp.zeros((B, H), jnp.float32)
            last_layer = (l == num_layers - 1)
            # T*num_layers is tiny (16) -> full Python unroll keeps LLO visibility.
            for t in range(T):
                gates = proj[t * B:(t + 1) * B, :] + jnp.dot(
                    h, whh, preferred_element_type=jnp.float32)                 # (B, 4H)
                # 2 EUP passes over the full 4H-lane vreg, then cheap lane slices.
                sig = jax.nn.sigmoid(gates)
                tng = jnp.tanh(gates)
                i_g = sig[:, 0 * H:1 * H]
                f_g = sig[:, 1 * H:2 * H]
                g_g = tng[:, 2 * H:3 * H]
                o_g = sig[:, 3 * H:4 * H]
                c = f_g * c + i_g * g_g
                h = o_g * jnp.tanh(c)
                if not last_layer:
                    slab_ref[t * B:(t + 1) * B, :] = h   # next layer's input slab
            if not last_layer:
                seq = slab_ref[...]                      # (T*B, H)

        # `h` now equals lstm_out[:, -1, :] of the last layer.

        # ---------------- MLP head (dropout = identity at inference) ---------------------
        z = jnp.maximum(
            jnp.dot(h, fc1_w_ref[...], preferred_element_type=jnp.float32) + fc1_b_ref[...],
            0.0)
        z = jnp.maximum(
            jnp.dot(z, fc2_w_ref[...], preferred_element_type=jnp.float32) + fc2_b_ref[...],
            0.0)
        q = jnp.dot(z, fco_w_ref[...], preferred_element_type=jnp.float32) + fco_b_ref[...]
        out_ref[...] = q.astype(out_ref.dtype)           # lane-dense (B, 128) store

    return kernel


# ----------------------------------------------------------------------------- wrapper
def lstm_qnetwork_forward(x, params, *, lstm_hidden, lstm_layers, action_size):
    B, T, F = x.shape
    H = lstm_hidden
    OUT_LANES = 128                                      # lane-dense output slab
    assert action_size <= OUT_LANES

    # Layout plumbing in the wrapper (free XLA work): time-major flattened input,
    # pre-transposed weights, folded LSTM biases, lane-padded output head.
    x_tm = jnp.transpose(x, (1, 0, 2)).reshape(T * B, F)
    args = [x_tm,
            params["ln_g"].reshape(1, F),
            params["ln_b"].reshape(1, F)]
    for l in range(lstm_layers):
        args += [params[f"w_ih_{l}"].T,                                  # (in_dim, 4H)
                 params[f"w_hh_{l}"].T,                                  # (H, 4H)
                 (params[f"b_ih_{l}"] + params[f"b_hh_{l}"]).reshape(1, -1)]
    pad = OUT_LANES - action_size
    args += [params["fc1_w"].T, params["fc1_b"].reshape(1, -1),
             params["fc2_w"].T, params["fc2_b"].reshape(1, -1),
             jnp.pad(params["fco_w"].T, ((0, 0), (0, pad))),
             jnp.pad(params["fco_b"].reshape(1, -1), ((0, 0), (0, pad)))]

    kernel = _make_kernel(lstm_layers, H, T, B)
    vmem = pl.BlockSpec(memory_space=pltpu.MemorySpace.VMEM)
    # Gridless, fully VMEM-resident: everything is a few KiB.  A batch-tiled grid
    # with dimension_semantics=("parallel",) only pays off at much larger B.
    q_pad = pl.pallas_call(
        kernel,
        out_shape=jax.ShapeDtypeStruct((B, OUT_LANES), jnp.float32),
        in_specs=[vmem] * len(args),
        out_specs=vmem,
        scratch_shapes=[pltpu.VMEM((T * B, H), jnp.float32)],
    )(*args)
    return q_pad[:, :action_size]


# ----------------------------------------------------------------------------- reference (pure JAX, for self-check)
def reference_forward(x, params, *, lstm_hidden, lstm_layers):
    H = lstm_hidden
    mean = jnp.mean(x, axis=-1, keepdims=True)
    var = jnp.mean((x - mean) ** 2, axis=-1, keepdims=True)
    xn = (x - mean) / jnp.sqrt(var + 1e-5) * params["ln_g"] + params["ln_b"]

    seq = xn
    h = None
    for l in range(lstm_layers):
        wih, whh = params[f"w_ih_{l}"], params[f"w_hh_{l}"]
        bih, bhh = params[f"b_ih_{l}"], params[f"b_hh_{l}"]
        B = x.shape[0]
        h = jnp.zeros((B, H)); c = jnp.zeros((B, H))
        outs = []
        for t in range(x.shape[1]):
            gates = seq[:, t, :] @ wih.T + bih + h @ whh.T + bhh
            i_g = jax.nn.sigmoid(gates[:, 0 * H:1 * H])
            f_g = jax.nn.sigmoid(gates[:, 1 * H:2 * H])
            g_g = jnp.tanh(gates[:, 2 * H:3 * H])
            o_g = jax.nn.sigmoid(gates[:, 3 * H:4 * H])
            c = f_g * c + i_g * g_g
            h = o_g * jnp.tanh(c)
            outs.append(h)
        seq = jnp.stack(outs, axis=1)
    z = jax.nn.relu(h @ params["fc1_w"].T + params["fc1_b"])
    z = jax.nn.relu(z @ params["fc2_w"].T + params["fc2_b"])
    return z @ params["fco_w"].T + params["fco_b"]


# ----------------------------------------------------------------------------- params
def init_params(key, feature_dim, lstm_hidden, lstm_layers, fc_hidden, action_size):
    params = {"ln_g": jnp.ones((feature_dim,), jnp.float32),
              "ln_b": jnp.zeros((feature_dim,), jnp.float32)}

    def uni(key, shape, bound):
        return jax.random.uniform(key, shape, jnp.float32, -bound, bound)

    k = 1.0 / jnp.sqrt(lstm_hidden)
    for l in range(lstm_layers):
        in_dim = feature_dim if l == 0 else lstm_hidden
        key, k1, k2, k3, k4 = jax.random.split(key, 5)
        params[f"w_ih_{l}"] = uni(k1, (4 * lstm_hidden, in_dim), k)
        params[f"w_hh_{l}"] = uni(k2, (4 * lstm_hidden, lstm_hidden), k)
        params[f"b_ih_{l}"] = uni(k3, (4 * lstm_hidden,), k)
        params[f"b_hh_{l}"] = uni(k4, (4 * lstm_hidden,), k)

    def linear(key, out_f, in_f):
        key, kw, kb = jax.random.split(key, 3)
        b = 1.0 / jnp.sqrt(in_f)
        return key, uni(kw, (out_f, in_f), b), uni(kb, (out_f,), b)

    key, params["fc1_w"], params["fc1_b"] = linear(key, fc_hidden, lstm_hidden)
    key, params["fc2_w"], params["fc2_b"] = linear(key, fc_hidden // 2, fc_hidden)
    key, params["fco_w"], params["fco_b"] = linear(key, action_size, fc_hidden // 2)
    return params, key


# ----------------------------------------------------------------------------- main
if __name__ == "__main__":
    # Module hyper-params (small, consistent with the PyTorch __init__):
    feature_dim, sequence_len = 16, 8
    lstm_hidden, lstm_layers = 32, 2
    fc_hidden, action_size = 32, 4
    batch = 2

    key = jax.random.PRNGKey(0)
    params, key = init_params(key, feature_dim, lstm_hidden, lstm_layers, fc_hidden, action_size)
    key, kx = jax.random.split(key)
    x = jax.random.normal(kx, (batch, sequence_len, feature_dim), jnp.float32)

    q = lstm_qnetwork_forward(x, params,
                              lstm_hidden=lstm_hidden,
                              lstm_layers=lstm_layers,
                              action_size=action_size)
    q = jax.block_until_ready(q)

    q_ref = reference_forward(x, params, lstm_hidden=lstm_hidden, lstm_layers=lstm_layers)
    assert q.shape == (batch, action_size)
    assert jnp.allclose(q, q_ref, atol=1e-4, rtol=1e-4), (q, q_ref)

    print("KERNEL_OK")
</pallas_src>

<mosaic_0001>
module attributes {stable_mosaic.version = 11 : i64} {
  func.func @kernel(%arg0: memref<16x16xf32, #tpu.memory_space<vmem>>, %arg1: memref<1x16xf32, #tpu.memory_space<vmem>>, %arg2: memref<1x16xf32, #tpu.memory_space<vmem>>, %arg3: memref<16x128xf32, #tpu.memory_space<vmem>>, %arg4: memref<32x128xf32, #tpu.memory_space<vmem>>, %arg5: memref<1x128xf32, #tpu.memory_space<vmem>>, %arg6: memref<32x128xf32, #tpu.memory_space<vmem>>, %arg7: memref<32x128xf32, #tpu.memory_space<vmem>>, %arg8: memref<1x128xf32, #tpu.memory_space<vmem>>, %arg9: memref<32x32xf32, #tpu.memory_space<vmem>>, %arg10: memref<1x32xf32, #tpu.memory_space<vmem>>, %arg11: memref<32x16xf32, #tpu.memory_space<vmem>>, %arg12: memref<1x16xf32, #tpu.memory_space<vmem>>, %arg13: memref<16x128xf32, #tpu.memory_space<vmem>>, %arg14: memref<1x128xf32, #tpu.memory_space<vmem>>, %arg15: memref<2x128xf32, #tpu.memory_space<vmem>>, %arg16: memref<16x32xf32, #tpu.memory_space<vmem>>) attributes {dimension_semantics = [], scalar_prefetch = 0 : i64, scratch_operands = 1 : i64, tpu.core_type = #tpu.core_type<tc>} {
    %c0 = arith.constant 0 : index
    %c0_0 = arith.constant 0 : index
    %0 = vector.load %arg0[%c0, %c0_0] : memref<16x16xf32, #tpu.memory_space<vmem>>, vector<16x16xf32>
    %cst = arith.constant dense<0.000000e+00> : vector<16xf32>
    %1 = vector.multi_reduction <add>, %0, %cst [1] : vector<16x16xf32> to vector<16xf32>
    %2 = vector.shape_cast %1 : vector<16xf32> to vector<16x1xf32>
    %cst_1 = arith.constant 1.600000e+01 : f32
    %3 = vector.broadcast %cst_1 : f32 to vector<16x1xf32>
    %4 = arith.divf %2, %3 : vector<16x1xf32>
    %5 = vector.broadcast %4 : vector<16x1xf32> to vector<16x16xf32>
    %6 = arith.subf %0, %5 : vector<16x16xf32>
    %7 = arith.mulf %6, %6 : vector<16x16xf32>
    %cst_2 = arith.constant dense<0.000000e+00> : vector<16xf32>
    %8 = vector.multi_reduction <add>, %7, %cst_2 [1] : vector<16x16xf32> to vector<16xf32>
    %9 = vector.shape_cast %8 : vector<16xf32> to vector<16x1xf32>
    %cst_3 = arith.constant 1.600000e+01 : f32
    %10 = vector.broadcast %cst_3 : f32 to vector<16x1xf32>
    %11 = arith.divf %9, %10 : vector<16x1xf32>
    %12 = vector.broadcast %4 : vector<16x1xf32> to vector<16x16xf32>
    %13 = arith.subf %0, %12 : vector<16x16xf32>
    %cst_4 = arith.constant 9.99999974E-6 : f32
    %14 = vector.broadcast %cst_4 : f32 to vector<16x1xf32>
    %15 = arith.addf %11, %14 : vector<16x1xf32>
    %16 = math.rsqrt %15 : vector<16x1xf32>
    %17 = vector.broadcast %16 : vector<16x1xf32> to vector<16x16xf32>
    %18 = arith.mulf %13, %17 : vector<16x16xf32>
    %c0_5 = arith.constant 0 : index
    %c0_6 = arith.constant 0 : index
    %19 = vector.load %arg1[%c0_5, %c0_6] : memref<1x16xf32, #tpu.memory_space<vmem>>, vector<1x16xf32>
    %20 = vector.broadcast %19 : vector<1x16xf32> to vector<16x16xf32>
    %21 = arith.mulf %18, %20 : vector<16x16xf32>
    %c0_7 = arith.constant 0 : index
    %c0_8 = arith.constant 0 : index
    %22 = vector.load %arg2[%c0_7, %c0_8] : memref<1x16xf32, #tpu.memory_space<vmem>>, vector<1x16xf32>
    %23 = vector.broadcast %22 : vector<1x16xf32> to vector<16x16xf32>
    %24 = arith.addf %21, %23 : vector<16x16xf32>
    %c0_9 = arith.constant 0 : index
    %c0_10 = arith.constant 0 : index
    %25 = vector.load %arg3[%c0_9, %c0_10] : memref<16x128xf32, #tpu.memory_space<vmem>>, vector<16x128xf32>
    %c0_11 = arith.constant 0 : index
    %c0_12 = arith.constant 0 : index
    %26 = vector.load %arg4[%c0_11, %c0_12] : memref<32x128xf32, #tpu.memory_space<vmem>>, vector<32x128xf32>
    %c0_13 = arith.constant 0 : index
    %c0_14 = arith.constant 0 : index
    %27 = vector.load %arg5[%c0_13, %c0_14] : memref<1x128xf32, #tpu.memory_space<vmem>>, vector<1x128xf32>
    %cst_15 = arith.constant dense<0.000000e+00> : vector<16x128xf32>
    %28 = tpu.matmul %24, %25, %cst_15 {dimension_numbers = #tpu.dot_dimension_numbers<[1], [0], [0], [1], [0, 0, 1, 1], [], []>} : vector<16x16xf32>, vector<16x128xf32>, vector<16x128xf32> -> vector<16x128xf32>
    %29 = vector.broadcast %27 : vector<1x128xf32> to vector<16x128xf32>
    %30 = arith.addf %28, %29 : vector<16x128xf32>
    %cst_16 = arith.constant 0.000000e+00 : f32
    %31 = vector.broadcast %cst_16 : f32 to vector<2x32xf32>
    %cst_17 = arith.constant 0.000000e+00 : f32
    %32 = vector.broadcast %cst_17 : f32 to vector<2x32xf32>
    %33 = vector.extract_strided_slice %30 {offsets = [0, 0], sizes = [2, 128], strides = [1, 1]} : vector<16x128xf32> to vector<2x128xf32>
    %cst_18 = arith.constant dense<0.000000e+00> : vector<2x128xf32>
    %34 = tpu.matmul %31, %26, %cst_18 {dimension_numbers = #tpu.dot_dimension_numbers<[1], [0], [0], [1], [0, 0, 1, 1], [], []>} : vector<2x32xf32>, vector<32x128xf32>, vector<2x128xf32> -> vector<2x128xf32>
    %35 = arith.addf %33, %34 : vector<2x128xf32>
    %36 = arith.negf %35 : vector<2x128xf32>
    %37 = math.exp %36 : vector<2x128xf32>
    %cst_19 = arith.constant 1.000000e+00 : f32
    %38 = vector.broadcast %cst_19 : f32 to vector<2x128xf32>
    %39 = arith.addf %38, %37 : vector<2x128xf32>
    %40 = arith.divf %38, %39 : vector<2x128xf32>
    %41 = math.tanh %35 : vector<2x128xf32>
    %42 = vector.extract_strided_slice %40 {offsets = [0, 0], sizes = [2, 32], strides = [1, 1]} : vector<2x128xf32> to vector<2x32xf32>
    %43 = vector.extract_strided_slice %40 {offsets = [0, 32], sizes = [2, 32], strides = [1, 1]} : vector<2x128xf32> to vector<2x32xf32>
    %44 = vector.extract_strided_slice %41 {offsets = [0, 64], sizes = [2, 32], strides = [1, 1]} : vector<2x128xf32> to vector<2x32xf32>
    %45 = vector.extract_strided_slice %40 {offsets = [0, 96], sizes = [2, 32], strides = [1, 1]} : vector<2x128xf32> to vector<2x32xf32>
    %46 = arith.mulf %43, %32 : vector<2x32xf32>
    %47 = arith.mulf %42, %44 : vector<2x32xf32>
    %48 = arith.addf %46, %47 : vector<2x32xf32>
    %49 = math.tanh %48 : vector<2x32xf32>
    %50 = arith.mulf %45, %49 : vector<2x32xf32>
    %c0_20 = arith.constant 0 : index
    %c0_21 = arith.constant 0 : index
    %51 = vector.load %arg16[%c0_20, %c0_21] : memref<16x32xf32, #tpu.memory_space<vmem>>, vector<2x32xf32>
    tpu.vector_store %arg16[%c0_20, %c0_21], %50 {strides = array<i32>} : memref<16x32xf32, #tpu.memory_space<vmem>>, vector<2x32xf32>,
    %52 = vector.extract_strided_slice %30 {offsets = [2, 0], sizes = [2, 128], strides = [1, 1]} : vector<16x128xf32> to vector<2x128xf32>
    %cst_22 = arith.constant dense<0.000000e+00> : vector<2x128xf32>
    %53 = tpu.matmul %50, %26, %cst_22 {dimension_numbers = #tpu.dot_dimension_numbers<[1], [0], [0], [1], [0, 0, 1, 1], [], []>} : vector<2x32xf32>, vector<32x128xf32>, vector<2x128xf32> -> vector<2x128xf32>
    %54 = arith.addf %52, %53 : vector<2x128xf32>
    %55 = arith.negf %54 : vector<2x128xf32>
    %56 = math.exp %55 : vector<2x128xf32>
    %cst_23 = arith.constant 1.000000e+00 : f32
    %57 = vector.broadcast %cst_23 : f32 to vector<2x128xf32>
    %58 = arith.addf %57, %56 : vector<2x128xf32>
    %59 = arith.divf %57, %58 : vector<2x128xf32>
    %60 = math.tanh %54 : vector<2x128xf32>
    %61 = vector.extract_strided_slice %59 {offsets = [0, 0], sizes = [2, 32], strides = [1, 1]} : vector<2x128xf32> to vector<2x32xf32>
    %62 = vector.extract_strided_slice %59 {offsets = [0, 32], sizes = [2, 32], strides = [1, 1]} : vector<2x128xf32> to vector<2x32xf32>
    %63 = vector.extract_strided_slice %60 {offsets = [0, 64], sizes = [2, 32], strides = [1, 1]} : vector<2x128xf32> to vector<2x32xf32>
    %64 = vector.extract_strided_slice %59 {offsets = [0, 96], sizes = [2, 32], strides = [1, 1]} : vector<2x128xf32> to vector<2x32xf32>
    %65 = arith.mulf %62, %48 : vector<2x32xf32>
    %66 = arith.mulf %61, %63 : vector<2x32xf32>
    %67 = arith.addf %65, %66 : vector<2x32xf32>
    %68 = math.tanh %67 : vector<2x32xf32>
    %69 = arith.mulf %64, %68 : vector<2x32xf32>
    %c2 = arith.constant 2 : index
    %c0_24 = arith.constant 0 : index
    %70 = vector.load %arg16[%c2, %c0_24] : memref<16x32xf32, #tpu.memory_space<vmem>>, vector<2x32xf32>
    tpu.vector_store %arg16[%c2, %c0_24], %69 {strides = array<i32>} : memref<16x32xf32, #tpu.memory_space<vmem>>, vector<2x32xf32>,
    %71 = vector.extract_strided_slice %30 {offsets = [4, 0], sizes = [2, 128], strides = [1, 1]} : vector<16x128xf32> to vector<2x128xf32>
    %cst_25 = arith.constant dense<0.000000e+00> : vector<2x128xf32>
    %72 = tpu.matmul %69, %26, %cst_25 {dimension_numbers = #tpu.dot_dimension_numbers<[1], [0], [0], [1], [0, 0, 1, 1], [], []>} : vector<2x32xf32>, vector<32x128xf32>, vector<2x128xf32> -> vector<2x128xf32>
    %73 = arith.addf %71, %72 : vector<2x128xf32>
    %74 = arith.negf %73 : vector<2x128xf32>
    %75 = math.exp %74 : vector<2x128xf32>
    %cst_26 = arith.constant 1.000000e+00 : f32
    %76 = vector.broadcast %cst_26 : f32 to vector<2x128xf32>
    %77 = arith.addf %76, %75 : vector<2x128xf32>
    %78 = arith.divf %76, %77 : vector<2x128xf32>
    %79 = math.tanh %73 : vector<2x128xf32>
    %80 = vector.extract_strided_slice %78 {offsets = [0, 0], sizes = [2, 32], strides = [1, 1]} : vector<2x128xf32> to vector<2x32xf32>
    %81 = vector.extract_strided_slice %78 {offsets = [0, 32], sizes = [2, 32], strides = [1, 1]} : vector<2x128xf32> to vector<2x32xf32>
    %82 = vector.extract_strided_slice %79 {offsets = [0, 64], sizes = [2, 32], strides = [1, 1]} : vector<2x128xf32> to vector<2x32xf32>
    %83 = vector.extract_strided_slice %78 {offsets = [0, 96], sizes = [2, 32], strides = [1, 1]} : vector<2x128xf32> to vector<2x32xf32>
    %84 = arith.mulf %81, %67 : vector<2x32xf32>
    %85 = arith.mulf %80, %82 : vector<2x32xf32>
    %86 = arith.addf %84, %85 : vector<2x32xf32>
    %87 = math.tanh %86 : vector<2x32xf32>
    %88 = arith.mulf %83, %87 : vector<2x32xf32>
    %c4 = arith.constant 4 : index
    %c0_27 = arith.constant 0 : index
    %89 = vector.load %arg16[%c4, %c0_27] : memref<16x32xf32, #tpu.memory_space<vmem>>, vector<2x32xf32>
    tpu.vector_store %arg16[%c4, %c0_27], %88 {strides = array<i32>} : memref<16x32xf32, #tpu.memory_space<vmem>>, vector<2x32xf32>,
    %90 = vector.extract_strided_slice %30 {offsets = [6, 0], sizes = [2, 128], strides = [1, 1]} : vector<16x128xf32> to vector<2x128xf32>
    %cst_28 = arith.constant dense<0.000000e+00> : vector<2x128xf32>
    %91 = tpu.matmul %88, %26, %cst_28 {dimension_numbers = #tpu.dot_dimension_numbers<[1], [0], [0], [1], [0, 0, 1, 1], [], []>} : vector<2x32xf32>, vector<32x128xf32>, vector<2x128xf32> -> vector<2x128xf32>
    %92 = arith.addf %90, %91 : vector<2x128xf32>
    %93 = arith.negf %92 : vector<2x128xf32>
    %94 = math.exp %93 : vector<2x128xf32>
    %cst_29 = arith.constant 1.000000e+00 : f32
    %95 = vector.broadcast %cst_29 : f32 to vector<2x128xf32>
    %96 = arith.addf %95, %94 : vector<2x128xf32>
    %97 = arith.divf %95, %96 : vector<2x128xf32>
    %98 = math.tanh %92 : vector<2x128xf32>
    %99 = vector.extract_strided_slice %97 {offsets = [0, 0], sizes = [2, 32], strides = [1, 1]} : vector<2x128xf32> to vector<2x32xf32>
    %100 = vector.extract_strided_slice %97 {offsets = [0, 32], sizes = [2, 32], strides = [1, 1]} : vector<2x128xf32> to vector<2x32xf32>
    %101 = vector.extract_strided_slice %98 {offsets = [0, 64], sizes = [2, 32], strides = [1, 1]} : vector<2x128xf32> to vector<2x32xf32>
    %102 = vector.extract_strided_slice %97 {offsets = [0, 96], sizes = [2, 32], strides = [1, 1]} : vector<2x128xf32> to vector<2x32xf32>
    %103 = arith.mulf %100, %86 : vector<2x32xf32>
    %104 = arith.mulf %99, %101 : vector<2x32xf32>
    %105 = arith.addf %103, %104 : vector<2x32xf32>
    %106 = math.tanh %105 : vector<2x32xf32>
    %107 = arith.mulf %102, %106 : vector<2x32xf32>
    %c6 = arith.constant 6 : index
    %c0_30 = arith.constant 0 : index
    %108 = vector.load %arg16[%c6, %c0_30] : memref<16x32xf32, #tpu.memory_space<vmem>>, vector<2x32xf32>
    tpu.vector_store %arg16[%c6, %c0_30], %107 {strides = array<i32>} : memref<16x32xf32, #tpu.memory_space<vmem>>, vector<2x32xf32>,
    %109 = vector.extract_strided_slice %30 {offsets = [8, 0], sizes = [2, 128], strides = [1, 1]} : vector<16x128xf32> to vector<2x128xf32>
    %cst_31 = arith.constant dense<0.000000e+00> : vector<2x128xf32>
    %110 = tpu.matmul %107, %26, %cst_31 {dimension_numbers = #tpu.dot_dimension_numbers<[1], [0], [0], [1], [0, 0, 1, 1], [], []>} : vector<2x32xf32>, vector<32x128xf32>, vector<2x128xf32> -> vector<2x128xf32>
    %111 = arith.addf %109, %110 : vector<2x128xf32>
    %112 = arith.negf %111 : vector<2x128xf32>
    %113 = math.exp %112 : vector<2x128xf32>
    %cst_32 = arith.constant 1.000000e+00 : f32
    %114 = vector.broadcast %cst_32 : f32 to vector<2x128xf32>
    %115 = arith.addf %114, %113 : vector<2x128xf32>
    %116 = arith.divf %114, %115 : vector<2x128xf32>
    %117 = math.tanh %111 : vector<2x128xf32>
    %118 = vector.extract_strided_slice %116 {offsets = [0, 0], sizes = [2, 32], strides = [1, 1]} : vector<2x128xf32> to vector<2x32xf32>
    %119 = vector.extract_strided_slice %116 {offsets = [0, 32], sizes = [2, 32], strides = [1, 1]} : vector<2x128xf32> to vector<2x32xf32>
    %120 = vector.extract_strided_slice %117 {offsets = [0, 64], sizes = [2, 32], strides = [1, 1]} : vector<2x128xf32> to vector<2x32xf32>
    %121 = vector.extract_strided_slice %116 {offsets = [0, 96], sizes = [2, 32], strides = [1, 1]} : vector<2x128xf32> to vector<2x32xf32>
    %122 = arith.mulf %119, %105 : vector<2x32xf32>
    %123 = arith.mulf %118, %120 : vector<2x32xf32>
    %124 = arith.addf %122, %123 : vector<2x32xf32>
    %125 = math.tanh %124 : vector<2x32xf32>
    %126 = arith.mulf %121, %125 : vector<2x32xf32>
    %c8 = arith.constant 8 : index
    %c0_33 = arith.constant 0 : index
    %127 = vector.load %arg16[%c8, %c0_33] : memref<16x32xf32, #tpu.memory_space<vmem>>, vector<2x32xf32>
    tpu.vector_store %arg16[%c8, %c0_33], %126 {strides = array<i32>} : memref<16x32xf32, #tpu.memory_space<vmem>>, vector<2x32xf32>,
    %128 = vector.extract_strided_slice %30 {offsets = [10, 0], sizes = [2, 128], strides = [1, 1]} : vector<16x128xf32> to vector<2x128xf32>
    %cst_34 = arith.constant dense<0.000000e+00> : vector<2x128xf32>
    %129 = tpu.matmul %126, %26, %cst_34 {dimension_numbers = #tpu.dot_dimension_numbers<[1], [0], [0], [1], [0, 0, 1, 1], [], []>} : vector<2x32xf32>, vector<32x128xf32>, vector<2x128xf32> -> vector<2x128xf32>
    %130 = arith.addf %128, %129 : vector<2x128xf32>
    %131 = arith.negf %130 : vector<2x128xf32>
    %132 = math.exp %131 : vector<2x128xf32>
    %cst_35 = arith.constant 1.000000e+00 : f32
    %133 = vector.broadcast %cst_35 : f32 to vector<2x128xf32>
    %134 = arith.addf %133, %132 : vector<2x128xf32>
    %135 = arith.divf %133, %134 : vector<2x128xf32>
    %136 = math.tanh %130 : vector<2x128xf32>
    %137 = vector.extract_strided_slice %135 {offsets = [0, 0], sizes = [2, 32], strides = [1, 1]} : vector<2x128xf32> to vector<2x32xf32>
    %138 = vector.extract_strided_slice %135 {offsets = [0, 32], sizes = [2, 32], strides = [1, 1]} : vector<2x128xf32> to vector<2x32xf32>
    %139 = vector.extract_strided_slice %136 {offsets = [0, 64], sizes = [2, 32], strides = [1, 1]} : vector<2x128xf32> to vector<2x32xf32>
    %140 = vector.extract_strided_slice %135 {offsets = [0, 96], sizes = [2, 32], strides = [1, 1]} : vector<2x128xf32> to vector<2x32xf32>
    %141 = arith.mulf %138, %124 : vector<2x32xf32>
    %142 = arith.mulf %137, %139 : vector<2x32xf32>
    %143 = arith.addf %141, %142 : vector<2x32xf32>
    %144 = math.tanh %143 : vector<2x32xf32>
    %145 = arith.mulf %140, %144 : vector<2x32xf32>
    %c10 = arith.constant 10 : index
    %c0_36 = arith.constant 0 : index
    %146 = vector.load %arg16[%c10, %c0_36] : memref<16x32xf32, #tpu.memory_space<vmem>>, vector<2x32xf32>
    tpu.vector_store %arg16[%c10, %c0_36], %145 {strides = array<i32>} : memref<16x32xf32, #tpu.memory_space<vmem>>, vector<2x32xf32>,
    %147 = vector.extract_strided_slice %30 {offsets = [12, 0], sizes = [2, 128], strides = [1, 1]} : vector<16x128xf32> to vector<2x128xf32>
    %cst_37 = arith.constant dense<0.000000e+00> : vector<2x128xf32>
    %148 = tpu.matmul %145, %26, %cst_37 {dimension_numbers = #tpu.dot_dimension_numbers<[1], [0], [0], [1], [0, 0, 1, 1], [], []>} : vector<2x32xf32>, vector<32x128xf32>, vector<2x128xf32> -> vector<2x128xf32>
    %149 = arith.addf %147, %148 : vector<2x128xf32>
    %150 = arith.negf %149 : vector<2x128xf32>
    %151 = math.exp %150 : vector<2x128xf32>
    %cst_38 = arith.constant 1.000000e+00 : f32
    %152 = vector.broadcast %cst_38 : f32 to vector<2x128xf32>
    %153 = arith.addf %152, %151 : vector<2x128xf32>
    %154 = arith.divf %152, %153 : vector<2x128xf32>
    %155 = math.tanh %149 : vector<2x128xf32>
    %156 = vector.extract_strided_slice %154 {offsets = [0, 0], sizes = [2, 32], strides = [1, 1]} : vector<2x128xf32> to vector<2x32xf32>
    %157 = vector.extract_strided_slice %154 {offsets = [0, 32], sizes = [2, 32], strides = [1, 1]} : vector<2x128xf32> to vector<2x32xf32>
    %158 = vector.extract_strided_slice %155 {offsets = [0, 64], sizes = [2, 32], strides = [1, 1]} : vector<2x128xf32> to vector<2x32xf32>
    %159 = vector.extract_strided_slice %154 {offsets = [0, 96], sizes = [2, 32], strides = [1, 1]} : vector<2x128xf32> to vector<2x32xf32>
    %160 = arith.mulf %157, %143 : vector<2x32xf32>
    %161 = arith.mulf %156, %158 : vector<2x32xf32>
    %162 = arith.addf %160, %161 : vector<2x32xf32>
    %163 = math.tanh %162 : vector<2x32xf32>
    %164 = arith.mulf %159, %163 : vector<2x32xf32>
    %c12 = arith.constant 12 : index
    %c0_39 = arith.constant 0 : index
    %165 = vector.load %arg16[%c12, %c0_39] : memref<16x32xf32, #tpu.memory_space<vmem>>, vector<2x32xf32>
    tpu.vector_store %arg16[%c12, %c0_39], %164 {strides = array<i32>} : memref<16x32xf32, #tpu.memory_space<vmem>>, vector<2x32xf32>,
    %166 = vector.extract_strided_slice %30 {offsets = [14, 0], sizes = [2, 128], strides = [1, 1]} : vector<16x128xf32> to vector<2x128xf32>
    %cst_40 = arith.constant dense<0.000000e+00> : vector<2x128xf32>
    %167 = tpu.matmul %164, %26, %cst_40 {dimension_numbers = #tpu.dot_dimension_numbers<[1], [0], [0], [1], [0, 0, 1, 1], [], []>} : vector<2x32xf32>, vector<32x128xf32>, vector<2x128xf32> -> vector<2x128xf32>
    %168 = arith.addf %166, %167 : vector<2x128xf32>
    %169 = arith.negf %168 : vector<2x128xf32>
    %170 = math.exp %169 : vector<2x128xf32>
    %cst_41 = arith.constant 1.000000e+00 : f32
    %171 = vector.broadcast %cst_41 : f32 to vector<2x128xf32>
    %172 = arith.addf %171, %170 : vector<2x128xf32>
    %173 = arith.divf %171, %172 : vector<2x128xf32>
    %174 = math.tanh %168 : vector<2x128xf32>
    %175 = vector.extract_strided_slice %173 {offsets = [0, 0], sizes = [2, 32], strides = [1, 1]} : vector<2x128xf32> to vector<2x32xf32>
    %176 = vector.extract_strided_slice %173 {offsets = [0, 32], sizes = [2, 32], strides = [1, 1]} : vector<2x128xf32> to vector<2x32xf32>
    %177 = vector.extract_strided_slice %174 {offsets = [0, 64], sizes = [2, 32], strides = [1, 1]} : vector<2x128xf32> to vector<2x32xf32>
    %178 = vector.extract_strided_slice %173 {offsets = [0, 96], sizes = [2, 32], strides = [1, 1]} : vector<2x128xf32> to vector<2x32xf32>
    %179 = arith.mulf %176, %162 : vector<2x32xf32>
    %180 = arith.mulf %175, %177 : vector<2x32xf32>
    %181 = arith.addf %179, %180 : vector<2x32xf32>
    %182 = math.tanh %181 : vector<2x32xf32>
    %183 = arith.mulf %178, %182 : vector<2x32xf32>
    %c14 = arith.constant 14 : index
    %c0_42 = arith.constant 0 : index
    %184 = vector.load %arg16[%c14, %c0_42] : memref<16x32xf32, #tpu.memory_space<vmem>>, vector<2x32xf32>
    tpu.vector_store %arg16[%c14, %c0_42], %183 {strides = array<i32>} : memref<16x32xf32, #tpu.memory_space<vmem>>, vector<2x32xf32>,
    %c0_43 = arith.constant 0 : index
    %c0_44 = arith.constant 0 : index
    %185 = vector.load %arg16[%c0_43, %c0_44] : memref<16x32xf32, #tpu.memory_space<vmem>>, vector<16x32xf32>
    %c0_45 = arith.constant 0 : index
    %c0_46 = arith.constant 0 : index
    %186 = vector.load %arg6[%c0_45, %c0_46] : memref<32x128xf32, #tpu.memory_space<vmem>>, vector<32x128xf32>
    %c0_47 = arith.constant 0 : index
    %c0_48 = arith.constant 0 : index
    %187 = vector.load %arg7[%c0_47, %c0_48] : memref<32x128xf32, #tpu.memory_space<vmem>>, vector<32x128xf32>
    %c0_49 = arith.constant 0 : index
    %c0_50 = arith.constant 0 : index
    %188 = vector.load %arg8[%c0_49, %c0_50] : memref<1x128xf32, #tpu.memory_space<vmem>>, vector<1x128xf32>
    %cst_51 = arith.constant dense<0.000000e+00> : vector<16x128xf32>
    %189 = tpu.matmul %185, %186, %cst_51 {dimension_numbers = #tpu.dot_dimension_numbers<[1], [0], [0], [1], [0, 0, 1, 1], [], []>} : vector<16x32xf32>, vector<32x128xf32>, vector<16x128xf32> -> vector<16x128xf32>
    %190 = vector.broadcast %188 : vector<1x128xf32> to vector<16x128xf32>
    %191 = arith.addf %189, %190 : vector<16x128xf32>
    %cst_52 = arith.constant 0.000000e+00 : f32
    %192 = vector.broadcast %cst_52 : f32 to vector<2x32xf32>
    %cst_53 = arith.constant 0.000000e+00 : f32
    %193 = vector.broadcast %cst_53 : f32 to vector<2x32xf32>
    %194 = vector.extract_strided_slice %191 {offsets = [0, 0], sizes = [2, 128], strides = [1, 1]} : vector<16x128xf32> to vector<2x128xf32>
    %cst_54 = arith.constant dense<0.000000e+00> : vector<2x128xf32>
    %195 = tpu.matmul %192, %187, %cst_54 {dimension_numbers = #tpu.dot_dimension_numbers<[1], [0], [0], [1], [0, 0, 1, 1], [], []>} : vector<2x32xf32>, vector<32x128xf32>, vector<2x128xf32> -> vector<2x128xf32>
    %196 = arith.addf %194, %195 : vector<2x128xf32>
    %197 = arith.negf %196 : vector<2x128xf32>
    %198 = math.exp %197 : vector<2x128xf32>
    %cst_55 = arith.constant 1.000000e+00 : f32
    %199 = vector.broadcast %cst_55 : f32 to vector<2x128xf32>
    %200 = arith.addf %199, %198 : vector<2x128xf32>
    %201 = arith.divf %199, %200 : vector<2x128xf32>
    %202 = math.tanh %196 : vector<2x128xf32>
    %203 = vector.extract_strided_slice %201 {offsets = [0, 0], sizes = [2, 32], strides = [1, 1]} : vector<2x128xf32> to vector<2x32xf32>
    %204 = vector.extract_strided_slice %201 {offsets = [0, 32], sizes = [2, 32], strides = [1, 1]} : vector<2x128xf32> to vector<2x32xf32>
    %205 = vector.extract_strided_slice %202 {offsets = [0, 64], sizes = [2, 32], strides = [1, 1]} : vector<2x128xf32> to vector<2x32xf32>
    %206 = vector.extract_strided_slice %201 {offsets = [0, 96], sizes = [2, 32], strides = [1, 1]} : vector<2x128xf32> to vector<2x32xf32>
    %207 = arith.mulf %204, %193 : vector<2x32xf32>
    %208 = arith.mulf %203, %205 : vector<2x32xf32>
    %209 = arith.addf %207, %208 : vector<2x32xf32>
    %210 = math.tanh %209 : vector<2x32xf32>
    %211 = arith.mulf %206, %210 : vector<2x32xf32>
    %212 = vector.extract_strided_slice %191 {offsets = [2, 0], sizes = [2, 128], strides = [1, 1]} : vector<16x128xf32> to vector<2x128xf32>
    %cst_56 = arith.constant dense<0.000000e+00> : vector<2x128xf32>
    %213 = tpu.matmul %211, %187, %cst_56 {dimension_numbers = #tpu.dot_dimension_numbers<[1], [0], [0], [1], [0, 0, 1, 1], [], []>} : vector<2x32xf32>, vector<32x128xf32>, vector<2x128xf32> -> vector<2x128xf32>
    %214 = arith.addf %212, %213 : vector<2x128xf32>
    %215 = arith.negf %214 : vector<2x128xf32>
    %216 = math.exp %215 : vector<2x128xf32>
    %cst_57 = arith.constant 1.000000e+00 : f32
    %217 = vector.broadcast %cst_57 : f32 to vector<2x128xf32>
    %218 = arith.addf %217, %216 : vector<2x128xf32>
    %219 = arith.divf %217, %218 : vector<2x128xf32>
    %220 = math.tanh %214 : vector<2x128xf32>
    %221 = vector.extract_strided_slice %219 {offsets = [0, 0], sizes = [2, 32], strides = [1, 1]} : vector<2x128xf32> to vector<2x32xf32>
    %222 = vector.extract_strided_slice %219 {offsets = [0, 32], sizes = [2, 32], strides = [1, 1]} : vector<2x128xf32> to vector<2x32xf32>
    %223 = vector.extract_strided_slice %220 {offsets = [0, 64], sizes = [2, 32], strides = [1, 1]} : vector<2x128xf32> to vector<2x32xf32>
    %224 = vector.extract_strided_slice %219 {offsets = [0, 96], sizes = [2, 32], strides = [1, 1]} : vector<2x128xf32> to vector<2x32xf32>
    %225 = arith.mulf %222, %209 : vector<2x32xf32>
    %226 = arith.mulf %221, %223 : vector<2x32xf32>
    %227 = arith.addf %225, %226 : vector<2x32xf32>
    %228 = math.tanh %227 : vector<2x32xf32>
    %229 = arith.mulf %224, %228 : vector<2x32xf32>
    %230 = vector.extract_strided_slice %191 {offsets = [4, 0], sizes = [2, 128], strides = [1, 1]} : vector<16x128xf32> to vector<2x128xf32>
    %cst_58 = arith.constant dense<0.000000e+00> : vector<2x128xf32>
    %231 = tpu.matmul %229, %187, %cst_58 {dimension_numbers = #tpu.dot_dimension_numbers<[1], [0], [0], [1], [0, 0, 1, 1], [], []>} : vector<2x32xf32>, vector<32x128xf32>, vector<2x128xf32> -> vector<2x128xf32>
    %232 = arith.addf %230, %231 : vector<2x128xf32>
    %233 = arith.negf %232 : vector<2x128xf32>
    %234 = math.exp %233 : vector<2x128xf32>
    %cst_59 = arith.constant 1.000000e+00 : f32
    %235 = vector.broadcast %cst_59 : f32 to vector<2x128xf32>
    %236 = arith.addf %235, %234 : vector<2x128xf32>
    %237 = arith.divf %235, %236 : vector<2x128xf32>
    %238 = math.tanh %232 : vector<2x128xf32>
    %239 = vector.extract_strided_slice %237 {offsets = [0, 0], sizes = [2, 32], strides = [1, 1]} : vector<2x128xf32> to vector<2x32xf32>
    %240 = vector.extract_strided_slice %237 {offsets = [0, 32], sizes = [2, 32], strides = [1, 1]} : vector<2x128xf32> to vector<2x32xf32>
    %241 = vector.extract_strided_slice %238 {offsets = [0, 64], sizes = [2, 32], strides = [1, 1]} : vector<2x128xf32> to vector<2x32xf32>
    %242 = vector.extract_strided_slice %237 {offsets = [0, 96], sizes = [2, 32], strides = [1, 1]} : vector<2x128xf32> to vector<2x32xf32>
    %243 = arith.mulf %240, %227 : vector<2x32xf32>
    %244 = arith.mulf %239, %241 : vector<2x32xf32>
    %245 = arith.addf %243, %244 : vector<2x32xf32>
    %246 = math.tanh %245 : vector<2x32xf32>
    %247 = arith.mulf %242, %246 : vector<2x32xf32>
    %248 = vector.extract_strided_slice %191 {offsets = [6, 0], sizes = [2, 128], strides = [1, 1]} : vector<16x128xf32> to vector<2x128xf32>
    %cst_60 = arith.constant dense<0.000000e+00> : vector<2x128xf32>
    %249 = tpu.matmul %247, %187, %cst_60 {dimension_numbers = #tpu.dot_dimension_numbers<[1], [0], [0], [1], [0, 0, 1, 1], [], []>} : vector<2x32xf32>, vector<32x128xf32>, vector<2x128xf32> -> vector<2x128xf32>
    %250 = arith.addf %248, %249 : vector<2x128xf32>
    %251 = arith.negf %250 : vector<2x128xf32>
    %252 = math.exp %251 : vector<2x128xf32>
    %cst_61 = arith.constant 1.000000e+00 : f32
    %253 = vector.broadcast %cst_61 : f32 to vector<2x128xf32>
    %254 = arith.addf %253, %252 : vector<2x128xf32>
    %255 = arith.divf %253, %254 : vector<2x128xf32>
    %256 = math.tanh %250 : vector<2x128xf32>
    %257 = vector.extract_strided_slice %255 {offsets = [0, 0], sizes = [2, 32], strides = [1, 1]} : vector<2x128xf32> to vector<2x32xf32>
    %258 = vector.extract_strided_slice %255 {offsets = [0, 32], sizes = [2, 32], strides = [1, 1]} : vector<2x128xf32> to vector<2x32xf32>
    %259 = vector.extract_strided_slice %256 {offsets = [0, 64], sizes = [2, 32], strides = [1, 1]} : vector<2x128xf32> to vector<2x32xf32>
    %260 = vector.extract_strided_slice %255 {offsets = [0, 96], sizes = [2, 32], strides = [1, 1]} : vector<2x128xf32> to vector<2x32xf32>
    %261 = arith.mulf %258, %245 : vector<2x32xf32>
    %262 = arith.mulf %257, %259 : vector<2x32xf32>
    %263 = arith.addf %261, %262 : vector<2x32xf32>
    %264 = math.tanh %263 : vector<2x32xf32>
    %265 = arith.mulf %260, %264 : vector<2x32xf32>
    %266 = vector.extract_strided_slice %191 {offsets = [8, 0], sizes = [2, 128], strides = [1, 1]} : vector<16x128xf32> to vector<2x128xf32>
    %cst_62 = arith.constant dense<0.000000e+00> : vector<2x128xf32>
    %267 = tpu.matmul %265, %187, %cst_62 {dimension_numbers = #tpu.dot_dimension_numbers<[1], [0], [0], [1], [0, 0, 1, 1], [], []>} : vector<2x32xf32>, vector<32x128xf32>, vector<2x128xf32> -> vector<2x128xf32>
    %268 = arith.addf %266, %267 : vector<2x128xf32>
    %269 = arith.negf %268 : vector<2x128xf32>
    %270 = math.exp %269 : vector<2x128xf32>
    %cst_63 = arith.constant 1.000000e+00 : f32
    %271 = vector.broadcast %cst_63 : f32 to vector<2x128xf32>
    %272 = arith.addf %271, %270 : vector<2x128xf32>
    %273 = arith.divf %271, %272 : vector<2x128xf32>
    %274 = math.tanh %268 : vector<2x128xf32>
    %275 = vector.extract_strided_slice %273 {offsets = [0, 0], sizes = [2, 32], strides = [1, 1]} : vector<2x128xf32> to vector<2x32xf32>
    %276 = vector.extract_strided_slice %273 {offsets = [0, 32], sizes = [2, 32], strides = [1, 1]} : vector<2x128xf32> to vector<2x32xf32>
    %277 = vector.extract_strided_slice %274 {offsets = [0, 64], sizes = [2, 32], strides = [1, 1]} : vector<2x128xf32> to vector<2x32xf32>
    %278 = vector.extract_strided_slice %273 {offsets = [0, 96], sizes = [2, 32], strides = [1, 1]} : vector<2x128xf32> to vector<2x32xf32>
    %279 = arith.mulf %276, %263 : vector<2x32xf32>
    %280 = arith.mulf %275, %277 : vector<2x32xf32>
    %281 = arith.addf %279, %280 : vector<2x32xf32>
    %282 = math.tanh %281 : vector<2x32xf32>
    %283 = arith.mulf %278, %282 : vector<2x32xf32>
    %284 = vector.extract_strided_slice %191 {offsets = [10, 0], sizes = [2, 128], strides = [1, 1]} : vector<16x128xf32> to vector<2x128xf32>
    %cst_64 = arith.constant dense<0.000000e+00> : vector<2x128xf32>
    %285 = tpu.matmul %283, %187, %cst_64 {dimension_numbers = #tpu.dot_dimension_numbers<[1], [0], [0], [1], [0, 0, 1, 1], [], []>} : vector<2x32xf32>, vector<32x128xf32>, vector<2x128xf32> -> vector<2x128xf32>
    %286 = arith.addf %284, %285 : vector<2x128xf32>
    %287 = arith.negf %286 : vector<2x128xf32>
    %288 = math.exp %287 : vector<2x128xf32>
    %cst_65 = arith.constant 1.000000e+00 : f32
    %289 = vector.broadcast %cst_65 : f32 to vector<2x128xf32>
    %290 = arith.addf %289, %288 : vector<2x128xf32>
    %291 = arith.divf %289, %290 : vector<2x128xf32>
    %292 = math.tanh %286 : vector<2x128xf32>
    %293 = vector.extract_strided_slice %291 {offsets = [0, 0], sizes = [2, 32], strides = [1, 1]} : vector<2x128xf32> to vector<2x32xf32>
    %294 = vector.extract_strided_slice %291 {offsets = [0, 32], sizes = [2, 32], strides = [1, 1]} : vector<2x128xf32> to vector<2x32xf32>
    %295 = vector.extract_strided_slice %292 {offsets = [0, 64], sizes = [2, 32], strides = [1, 1]} : vector<2x128xf32> to vector<2x32xf32>
    %296 = vector.extract_strided_slice %291 {offsets = [0, 96], sizes = [2, 32], strides = [1, 1]} : vector<2x128xf32> to vector<2x32xf32>
    %297 = arith.mulf %294, %281 : vector<2x32xf32>
    %298 = arith.mulf %293, %295 : vector<2x32xf32>
    %299 = arith.addf %297, %298 : vector<2x32xf32>
    %300 = math.tanh %299 : vector<2x32xf32>
    %301 = arith.mulf %296, %300 : vector<2x32xf32>
    %302 = vector.extract_strided_slice %191 {offsets = [12, 0], sizes = [2, 128], strides = [1, 1]} : vector<16x128xf32> to vector<2x128xf32>
    %cst_66 = arith.constant dense<0.000000e+00> : vector<2x128xf32>
    %303 = tpu.matmul %301, %187, %cst_66 {dimension_numbers = #tpu.dot_dimension_numbers<[1], [0], [0], [1], [0, 0, 1, 1], [], []>} : vector<2x32xf32>, vector<32x128xf32>, vector<2x128xf32> -> vector<2x128xf32>
    %304 = arith.addf %302, %303 : vector<2x128xf32>
    %305 = arith.negf %304 : vector<2x128xf32>
    %306 = math.exp %305 : vector<2x128xf32>
    %cst_67 = arith.constant 1.000000e+00 : f32
    %307 = vector.broadcast %cst_67 : f32 to vector<2x128xf32>
    %308 = arith.addf %307, %306 : vector<2x128xf32>
    %309 = arith.divf %307, %308 : vector<2x128xf32>
    %310 = math.tanh %304 : vector<2x128xf32>
    %311 = vector.extract_strided_slice %309 {offsets = [0, 0], sizes = [2, 32], strides = [1, 1]} : vector<2x128xf32> to vector<2x32xf32>
    %312 = vector.extract_strided_slice %309 {offsets = [0, 32], sizes = [2, 32], strides = [1, 1]} : vector<2x128xf32> to vector<2x32xf32>
    %313 = vector.extract_strided_slice %310 {offsets = [0, 64], sizes = [2, 32], strides = [1, 1]} : vector<2x128xf32> to vector<2x32xf32>
    %314 = vector.extract_strided_slice %309 {offsets = [0, 96], sizes = [2, 32], strides = [1, 1]} : vector<2x128xf32> to vector<2x32xf32>
    %315 = arith.mulf %312, %299 : vector<2x32xf32>
    %316 = arith.mulf %311, %313 : vector<2x32xf32>
    %317 = arith.addf %315, %316 : vector<2x32xf32>
    %318 = math.tanh %317 : vector<2x32xf32>
    %319 = arith.mulf %314, %318 : vector<2x32xf32>
    %320 = vector.extract_strided_slice %191 {offsets = [14, 0], sizes = [2, 128], strides = [1, 1]} : vector<16x128xf32> to vector<2x128xf32>
    %cst_68 = arith.constant dense<0.000000e+00> : vector<2x128xf32>
    %321 = tpu.matmul %319, %187, %cst_68 {dimension_numbers = #tpu.dot_dimension_numbers<[1], [0], [0], [1], [0, 0, 1, 1], [], []>} : vector<2x32xf32>, vector<32x128xf32>, vector<2x128xf32> -> vector<2x128xf32>
    %322 = arith.addf %320, %321 : vector<2x128xf32>
    %323 = arith.negf %322 : vector<2x128xf32>
    %324 = math.exp %323 : vector<2x128xf32>
    %cst_69 = arith.constant 1.000000e+00 : f32
    %325 = vector.broadcast %cst_69 : f32 to vector<2x128xf32>
    %326 = arith.addf %325, %324 : vector<2x128xf32>
    %327 = arith.divf %325, %326 : vector<2x128xf32>
    %328 = math.tanh %322 : vector<2x128xf32>
    %329 = vector.extract_strided_slice %327 {offsets = [0, 0], sizes = [2, 32], strides = [1, 1]} : vector<2x128xf32> to vector<2x32xf32>
    %330 = vector.extract_strided_slice %327 {offsets = [0, 32], sizes = [2, 32], strides = [1, 1]} : vector<2x128xf32> to vector<2x32xf32>
    %331 = vector.extract_strided_slice %328 {offsets = [0, 64], sizes = [2, 32], strides = [1, 1]} : vector<2x128xf32> to vector<2x32xf32>
    %332 = vector.extract_strided_slice %327 {offsets = [0, 96], sizes = [2, 32], strides = [1, 1]} : vector<2x128xf32> to vector<2x32xf32>
    %333 = arith.mulf %330, %317 : vector<2x32xf32>
    %334 = arith.mulf %329, %331 : vector<2x32xf32>
    %335 = arith.addf %333, %334 : vector<2x32xf32>
    %336 = math.tanh %335 : vector<2x32xf32>
    %337 = arith.mulf %332, %336 : vector<2x32xf32>
    %c0_70 = arith.constant 0 : index
    %c0_71 = arith.constant 0 : index
    %338 = vector.load %arg9[%c0_70, %c0_71] : memref<32x32xf32, #tpu.memory_space<vmem>>, vector<32x32xf32>
    %cst_72 = arith.constant dense<0.000000e+00> : vector<2x32xf32>
    %339 = tpu.matmul %337, %338, %cst_72 {dimension_numbers = #tpu.dot_dimension_numbers<[1], [0], [0], [1], [0, 0, 1, 1], [], []>} : vector<2x32xf32>, vector<32x32xf32>, vector<2x32xf32> -> vector<2x32xf32>
    %c0_73 = arith.constant 0 : index
    %c0_74 = arith.constant 0 : index
    %340 = vector.load %arg10[%c0_73, %c0_74] : memref<1x32xf32, #tpu.memory_space<vmem>>, vector<1x32xf32>
    %341 = vector.broadcast %340 : vector<1x32xf32> to vector<2x32xf32>
    %342 = arith.addf %339, %341 : vector<2x32xf32>
    %cst_75 = arith.constant 0.000000e+00 : f32
    %343 = vector.broadcast %cst_75 : f32 to vector<2x32xf32>
    %344 = arith.maximumf %342, %343 : vector<2x32xf32>
    %c0_76 = arith.constant 0 : index
    %c0_77 = arith.constant 0 : index
    %345 = vector.load %arg11[%c0_76, %c0_77] : memref<32x16xf32, #tpu.memory_space<vmem>>, vector<32x16xf32>
    %cst_78 = arith.constant dense<0.000000e+00> : vector<2x16xf32>
    %346 = tpu.matmul %344, %345, %cst_78 {dimension_numbers = #tpu.dot_dimension_numbers<[1], [0], [0], [1], [0, 0, 1, 1], [], []>} : vector<2x32xf32>, vector<32x16xf32>, vector<2x16xf32> -> vector<2x16xf32>
    %c0_79 = arith.constant 0 : index
    %c0_80 = arith.constant 0 : index
    %347 = vector.load %arg12[%c0_79, %c0_80] : memref<1x16xf32, #tpu.memory_space<vmem>>, vector<1x16xf32>
    %348 = vector.broadcast %347 : vector<1x16xf32> to vector<2x16xf32>
    %349 = arith.addf %346, %348 : vector<2x16xf32>
    %cst_81 = arith.constant 0.000000e+00 : f32
    %350 = vector.broadcast %cst_81 : f32 to vector<2x16xf32>
    %351 = arith.maximumf %349, %350 : vector<2x16xf32>
    %c0_82 = arith.constant 0 : index
    %c0_83 = arith.constant 0 : index
    %352 = vector.load %arg13[%c0_82, %c0_83] : memref<16x128xf32, #tpu.memory_space<vmem>>, vector<16x128xf32>
    %cst_84 = arith.constant dense<0.000000e+00> : vector<2x128xf32>
    %353 = tpu.matmul %351, %352, %cst_84 {dimension_numbers = #tpu.dot_dimension_numbers<[1], [0], [0], [1], [0, 0, 1, 1], [], []>} : vector<2x16xf32>, vector<16x128xf32>, vector<2x128xf32> -> vector<2x128xf32>
    %c0_85 = arith.constant 0 : index
    %c0_86 = arith.constant 0 : index
    %354 = vector.load %arg14[%c0_85, %c0_86] : memref<1x128xf32, #tpu.memory_space<vmem>>, vector<1x128xf32>
    %355 = vector.broadcast %354 : vector<1x128xf32> to vector<2x128xf32>
    %356 = arith.addf %353, %355 : vector<2x128xf32>
    %c0_87 = arith.constant 0 : index
    %c0_88 = arith.constant 0 : index
    %357 = vector.load %arg15[%c0_87, %c0_88] : memref<2x128xf32, #tpu.memory_space<vmem>>, vector<2x128xf32>
    tpu.vector_store %arg15[%c0_87, %c0_88], %356 {strides = array<i32>} : memref<2x128xf32, #tpu.memory_space<vmem>>, vector<2x128xf32>,
    return
  }
}

</mosaic_0001>

<bundles_post_ra>
// kernel: tpu_custom_call.1
= control target key start
LH: loop header
LB: loop body
LE: loop exit
PB: predicated region body
PF: predicated region fallthrough
CT: control target
= control target key end

     0   :  { %20 = vsyncpa [#allocation4], 0  ;;  %s3803_s0 = inlined_call_operand.hbm [shape: f32[16,16], index: 0, kind: input, shape index: {}]   ;;  %s3804_s1 = inlined_call_operand.vmem [shape: f32[1,16], index: 1, kind: input, shape index: {}]   ;;  %s3805_s2 = inlined_call_operand.hbm [shape: f32[1,16], index: 2, kind: input, shape index: {}]   ;;  %s3806_s3 = inlined_call_operand.hbm [shape: f32[16,128], index: 3, kind: input, shape index: {}]   ;;  %s3807_s4 = inlined_call_operand.vmem [shape: f32[32,128], index: 4, kind: input, shape index: {}]   ;;  %s3808_s5 = inlined_call_operand.hbm [shape: f32[1,128], index: 5, kind: input, shape index: {}]   ;;  %s3809_s6 = inlined_call_operand.vmem [shape: f32[32,128], index: 6, kind: input, shape index: {}]   ;;  %s3810_s7 = inlined_call_operand.hbm [shape: f32[32,128], index: 7, kind: input, shape index: {}]   ;;  %s3811_s8 = inlined_call_operand.hbm [shape: f32[1,128], index: 8, kind: input, shape index: {}]   ;;  %s3812_s9 = inlined_call_operand.hbm [shape: f32[32,32], index: 9, kind: input, shape index: {}]   ;;  %s3813_s10 = inlined_call_operand.hbm [shape: f32[1,32], index: 10, kind: input, shape index: {}]   ;;  %s3814_s11 = inlined_call_operand.vmem [shape: f32[32,16], index: 11, kind: input, shape index: {}]   ;;  %s3815_s12 = inlined_call_operand.hbm [shape: f32[1,16], index: 12, kind: input, shape index: {}]   ;;  %s3816_s13 = inlined_call_operand.vmem [shape: f32[16,128], index: 13, kind: input, shape index: {}]   ;;  %s3817_s14 = inlined_call_operand.vmem [shape: f32[1,128], index: 14, kind: input, shape index: {}]   ;;  %s3818_s15 = inlined_call_operand.hbm [shape: f32[2,128], index: 15, kind: output, shape index: {}]  }
   0x1   :  { %21 = vsyncpa [#allocation7], 0 }
   0x2   :  { %22 = vsyncpa [#allocation10], 0 }
   0x3   :  { %23 = vsyncpa [#allocation13], 0 }
   0x4   :  { %24 = vsyncpa [#allocation16], 0 }
   0x5   :  { %25 = vsyncpa [#allocation5], 0  ;;  %s3267_s18 = smov [#allocation6]   ;;  %s3268_s20 = smov [#allocation9]  }
   0x6   :  { %s46_s19 = sshll.u32 %s3267_s18, 4  ;;  %s70_s21 = sshll.u32 %s3268_s20, 4  ;;  %s47_s19 = int_to_ptr.vmem [resolvable:$true] %s46_s19  ;;  %s71_s21 = int_to_ptr.vmem [resolvable:$true] %s70_s21 }
   0x7   :  { %s3035_s24 = scalar_lea.hbm %s3805_s2, 16 }
   0x8   :  { %p3036_p0 = scmp.ne.s32.totalorder %s3805_s2, %s3035_s24  ;;  %p3039_p1 = scmp.lt.u32.totalorder %s3035_s24, %s3805_s2 }
   0xa   :  { %p3041_p2 = pnand %p3039_p1, %p3036_p0 }
   0xc   :  { %3044 = shalt.err (!%p3041_p2)
}
   0xd   :  { %s3045_s29 = scalar_lea.vmem %s47_s19, 16  ;;  %s3049_s30 = scalar_lea.vmem %s47_s19, 32 }
   0xe   :  { %p3046_p3 = scmp.ne.s32.totalorder %s47_s19, %s3045_s29  ;;  %p3050_p4 = scmp.lt.s32.totalorder %s47_s19, %s47_s19 }
   0xf   :  { %p3051_p5 = scmp.lt.s32.totalorder %s3049_s30, %s3045_s29 }
  0x11   :  { %p3052_p6 = por %p3051_p5, %p3050_p4 }
  0x13   :  { %p3053_p7 = pnand %p3052_p6, %p3046_p3 }
  0x15   :  { %3056 = shalt.err (!%p3053_p7)
}
  0x16   :  { %49 = dma.hbm_to_vmem [thread:$0]  %s3805_s2, 16, %s47_s19, [#allocation7]  }
  0x17   :  { %s3057_s22 = scalar_lea.hbm %s3808_s5, 16 }
  0x18   :  { %p3058_p8 = scmp.ne.s32.totalorder %s3808_s5, %s3057_s22  ;;  %p3061_p9 = scmp.lt.u32.totalorder %s3057_s22, %s3808_s5 }
  0x1a   :  { %p3063_p10 = pnand %p3061_p9, %p3058_p8 }
  0x1c   :  { %3066 = shalt.err (!%p3063_p10)
}
  0x1d   :  { %s3067_s27 = scalar_lea.vmem %s71_s21, 16  ;;  %s3071_s28 = scalar_lea.vmem %s71_s21, 32 }
  0x1e   :  { %p3068_p11 = scmp.ne.s32.totalorder %s71_s21, %s3067_s27  ;;  %p3072_p12 = scmp.lt.s32.totalorder %s71_s21, %s71_s21 }
  0x1f   :  { %p3073_p13 = scmp.lt.s32.totalorder %s3071_s28, %s3067_s27 }
  0x21   :  { %p3074_p0 = por %p3073_p13, %p3072_p12 }
  0x23   :  { %p3075_p1 = pnand %p3074_p0, %p3068_p11 }
  0x25   :  { %3078 = shalt.err (!%p3075_p1)
}
  0x26   :  { %73 = dma.hbm_to_vmem [thread:$0]  %s3808_s5, 16, %s71_s21, [#allocation10]  }
  0x27   :  { %s3269_s29 = smov [#allocation12]   ;;  %s3270_s16 = smov [#allocation15]  }
  0x28   :  { %s94_s30 = sshll.u32 %s3269_s29, 4  ;;  %s116_s17 = sshll.u32 %s3270_s16, 4  ;;  %s95_s30 = int_to_ptr.vmem [resolvable:$true] %s94_s30  ;;  %s117_s17 = int_to_ptr.vmem [resolvable:$true] %s116_s17 }
  0x29   :  { %s3079_s22 = scalar_lea.hbm %s3811_s8, 16 }
  0x2a   :  { %p3080_p2 = scmp.ne.s32.totalorder %s3811_s8, %s3079_s22  ;;  %p3083_p3 = scmp.lt.u32.totalorder %s3079_s22, %s3811_s8 }
  0x2c   :  { %p3085_p4 = pnand %p3083_p3, %p3080_p2 }
  0x2e   :  { %3088 = shalt.err (!%p3085_p4)
}
  0x2f   :  { %s3089_s5 = scalar_lea.vmem %s95_s30, 16  ;;  %s3093_s21 = scalar_lea.vmem %s95_s30, 32 }
  0x30   :  { %p3090_p5 = scmp.ne.s32.totalorder %s95_s30, %s3089_s5  ;;  %p3094_p6 = scmp.lt.s32.totalorder %s95_s30, %s95_s30 }
  0x31   :  { %p3095_p7 = scmp.lt.s32.totalorder %s3093_s21, %s3089_s5 }
  0x33   :  { %p3096_p8 = por %p3095_p7, %p3094_p6 }
  0x35   :  { %p3097_p9 = pnand %p3096_p8, %p3090_p5 }
  0x37   :  { %3100 = shalt.err (!%p3097_p9)
}
  0x38   :  { %97 = dma.hbm_to_vmem [thread:$0]  %s3811_s8, 16, %s95_s30, [#allocation13]  }
  0x39   :  { %s3101_s29 = scalar_lea.hbm %s3813_s10, 16 }
  0x3a   :  { %p3102_p10 = scmp.ne.s32.totalorder %s3813_s10, %s3101_s29  ;;  %p3105_p11 = scmp.lt.u32.totalorder %s3101_s29, %s3813_s10 }
  0x3c   :  { %p3107_p12 = pnand %p3105_p11, %p3102_p10 }
  0x3e   :  { %3110 = shalt.err (!%p3107_p12)
}
  0x3f   :  { %s3111_s23 = scalar_lea.vmem %s117_s17, 16  ;;  %s3115_s24 = scalar_lea.vmem %s117_s17, 32 }
  0x40   :  { %p3112_p13 = scmp.ne.s32.totalorder %s117_s17, %s3111_s23  ;;  %p3116_p0 = scmp.lt.s32.totalorder %s117_s17, %s117_s17 }
  0x41   :  { %p3117_p1 = scmp.lt.s32.totalorder %s3115_s24, %s3111_s23 }
  0x43   :  { %p3118_p2 = por %p3117_p1, %p3116_p0 }
  0x45   :  { %p3119_p3 = pnand %p3118_p2, %p3112_p13 }
  0x47   :  { %3122 = shalt.err (!%p3119_p3)
}
  0x48   :  { %119 = dma.hbm_to_vmem [thread:$0]  %s3813_s10, 16, %s117_s17, [#allocation16]  }
  0x49   :  { %s3271_s25 = smov [#allocation3]   ;;  %s3123_s27 = scalar_lea.hbm %s3803_s0, 256 }
  0x4a   :  { %s31_s26 = sshll.u32 %s3271_s25, 4  ;;  %p3124_p4 = scmp.ne.s32.totalorder %s3803_s0, %s3123_s27  ;;  %s32_s26 = int_to_ptr.vmem [resolvable:$true] %s31_s26 }
  0x4b   :  { %p3127_p5 = scmp.lt.u32.totalorder %s3123_s27, %s3803_s0 }
  0x4d   :  { %p3129_p6 = pnand %p3127_p5, %p3124_p4 }
  0x4f   :  { %3132 = shalt.err (!%p3129_p6)
}
  0x50   :  { %s3133_s16 = scalar_lea.vmem %s32_s26, 256  ;;  %p3138_p8 = scmp.lt.s32.totalorder %s32_s26, %s32_s26 }
  0x51   :  { %p3134_p7 = scmp.ne.s32.totalorder %s32_s26, %s3133_s16  ;;  %p3139_p9 = scmp.lt.s32.totalorder %s3133_s16, %s3133_s16 }
  0x53   :  { %p3140_p10 = por %p3139_p9, %p3138_p8 }
  0x55   :  { %p3141_p11 = pnand %p3140_p10, %p3134_p7 }
  0x57   :  { %3144 = shalt.err (!%p3141_p11)
}
  0x58   :  { %s3272_s10 = smov 128   ;;  %s3273_s17 = smov 8  }
  0x59   :  { %37 = dma.hbm_to_vmem [thread:$0]  %s3803_s0, 256, %s32_s26, [#allocation4], %s3272_s10, %s3272_s10, %s3273_s17  }
  0x5a   :  { %s3274_s22 = smov [#allocation8]   ;;  %s3275_s24 = smov [#allocation11]  }
  0x5b   :  { %s55_s23 = sshll.u32 %s3274_s22, 4  ;;  %s81_s8 = sshll.u32 %s3275_s24, 4  ;;  %s56_s23 = int_to_ptr.vmem [resolvable:$true] %s55_s23  ;;  %s82_s8 = int_to_ptr.vmem [resolvable:$true] %s81_s8 }
  0x5c   :  { %s3145_s5 = scalar_lea.hbm %s3806_s3, 256 }
  0x5d   :  { %p3146_p12 = scmp.ne.s32.totalorder %s3806_s3, %s3145_s5  ;;  %p3149_p13 = scmp.lt.u32.totalorder %s3145_s5, %s3806_s3 }
  0x5f   :  { %p3151_p0 = pnand %p3149_p13, %p3146_p12 }
  0x61   :  { %3154 = shalt.err (!%p3151_p0)
}
  0x62   :  { %s3155_s0 = scalar_lea.vmem %s56_s23, 256  ;;  %p3160_p2 = scmp.lt.s32.totalorder %s56_s23, %s56_s23 }
  0x63   :  { %p3156_p1 = scmp.ne.s32.totalorder %s56_s23, %s3155_s0  ;;  %p3161_p3 = scmp.lt.s32.totalorder %s3155_s0, %s3155_s0 }
  0x65   :  { %p3162_p4 = por %p3161_p3, %p3160_p2 }
  0x67   :  { %p3163_p5 = pnand %p3162_p4, %p3156_p1 }
  0x69   :  { %3166 = shalt.err (!%p3163_p5)
}
  0x6a   :  { %61 = dma.hbm_to_vmem [thread:$0]  %s3806_s3, 256, %s56_s23, [#allocation7], %s3272_s10, %s3272_s10, %s3273_s17  }
  0x6b   :  { %s3167_s18 = scalar_lea.hbm %s3810_s7, 512 }
  0x6c   :  { %p3168_p6 = scmp.ne.s32.totalorder %s3810_s7, %s3167_s18  ;;  %p3171_p7 = scmp.lt.u32.totalorder %s3167_s18, %s3810_s7 }
  0x6e   :  { %p3173_p8 = pnand %p3171_p7, %p3168_p6 }
  0x70   :  { %3176 = shalt.err (!%p3173_p8)
}
  0x71   :  { %s3177_s25 = scalar_lea.vmem %s82_s8, 512  ;;  %p3182_p10 = scmp.lt.s32.totalorder %s82_s8, %s82_s8 }
  0x72   :  { %p3178_p9 = scmp.ne.s32.totalorder %s82_s8, %s3177_s25  ;;  %p3183_p11 = scmp.lt.s32.totalorder %s3177_s25, %s3177_s25 }
  0x74   :  { %p3184_p12 = por %p3183_p11, %p3182_p10 }
  0x76   :  { %p3185_p13 = pnand %p3184_p12, %p3178_p9 }
  0x78   :  { %3188 = shalt.err (!%p3185_p13)
}
  0x79   :  { %87 = dma.hbm_to_vmem [thread:$0]  %s3810_s7, 512, %s82_s8, [#allocation10], %s3272_s10, %s3272_s10, %s3273_s17  }
  0x7a   :  { %s3276_s5 = smov [#allocation14]   ;;  %s3277_s27 = smov [#allocation17]  }
  0x7b   :  { %s103_s21 = sshll.u32 %s3276_s5, 4  ;;  %s128_s28 = sshll.u32 %s3277_s27, 4  ;;  %s104_s21 = int_to_ptr.vmem [resolvable:$true] %s103_s21  ;;  %s129_s28 = int_to_ptr.vmem [resolvable:$true] %s128_s28 }
  0x7c   :  { %s3189_s26 = scalar_lea.hbm %s3812_s9, 512 }
  0x7d   :  { %p3190_p0 = scmp.ne.s32.totalorder %s3812_s9, %s3189_s26  ;;  %p3193_p1 = scmp.lt.u32.totalorder %s3189_s26, %s3812_s9 }
  0x7f   :  { %p3195_p2 = pnand %p3193_p1, %p3190_p0 }
  0x81   :  { %3198 = shalt.err (!%p3195_p2)
}
  0x82   :  { %s3199_s7 = scalar_lea.vmem %s104_s21, 512  ;;  %p3204_p4 = scmp.lt.s32.totalorder %s104_s21, %s104_s21 }
  0x83   :  { %p3200_p3 = scmp.ne.s32.totalorder %s104_s21, %s3199_s7  ;;  %p3205_p5 = scmp.lt.s32.totalorder %s3199_s7, %s3199_s7 }
  0x85   :  { %p3206_p6 = por %p3205_p5, %p3204_p4 }
  0x87   :  { %p3207_p7 = pnand %p3206_p6, %p3200_p3 }
  0x89   :  { %3210 = shalt.err (!%p3207_p7)
}
  0x8a   :  { %109 = dma.hbm_to_vmem [thread:$0]  %s3812_s9, 512, %s104_s21, [#allocation13], %s3272_s10, %s3272_s10, %s3273_s17  }
  0x8b   :  { %s3211_s30 = scalar_lea.hbm %s3815_s12, 16 }
  0x8c   :  { %p3212_p8 = scmp.ne.s32.totalorder %s3815_s12, %s3211_s30  ;;  %p3215_p9 = scmp.lt.u32.totalorder %s3211_s30, %s3815_s12 }
  0x8e   :  { %p3217_p10 = pnand %p3215_p9, %p3212_p8 }
  0x90   :  { %3220 = shalt.err (!%p3217_p10)
}
  0x91   :  { %s3221_s27 = scalar_lea.vmem %s129_s28, 16  ;;  %s3225_s2 = scalar_lea.vmem %s129_s28, 32 }
  0x92   :  { %p3222_p11 = scmp.ne.s32.totalorder %s129_s28, %s3221_s27  ;;  %p3226_p12 = scmp.lt.s32.totalorder %s129_s28, %s129_s28 }
  0x93   :  { %p3227_p13 = scmp.lt.s32.totalorder %s3225_s2, %s3221_s27 }
  0x95   :  { %p3228_p0 = por %p3227_p13, %p3226_p12 }
  0x97   :  { %p3229_p1 = pnand %p3228_p0, %p3222_p11 }
  0x99   :  { %3232 = shalt.err (!%p3229_p1)
}
  0x9a   :  { %131 = dma.hbm_to_vmem [thread:$0]  %s3815_s12, 16, %s129_s28, [#allocation16]  }
  0x9b   :  { %3255 = dma.done.wait [#allocation4], 256  }
  0x9c   :  { %3256 = vsyncadd [#allocation4], 4294967040 }
  0x9d   :  { %3257 = dma.done.wait [#allocation7], 272  }
  0x9e   :  { %3258 = vsyncadd [#allocation7], 4294967024 }
  0x9f   :  { %3259 = dma.done.wait [#allocation10], 528  }
  0xa0   :  { %3260 = vsyncadd [#allocation10], 4294966768 }
  0xa1   :  { %3261 = dma.done.wait [#allocation13], 528  }
  0xa2   :  { %3262 = vsyncadd [#allocation13], 4294966768 }
  0xa3   :  { %3263 = dma.done.wait [#allocation16], 32  }
  0xa4   :  { %3264 = vsyncadd [#allocation16], 4294967264  ;;  %vm165_vm0 = vcmask 130048   ;;  %v163_v0 = vld [vmem:[#allocation3] sm:$0xff]  ;;  %v164_v1 = vld [vmem:[#allocation3 + $0x8] sm:$0xff]  ;;  %v3278_v17 = vmov 0.0|0.0  }
  0xa5   :  { %v166_v2 = vsel %vm165_vm0, %v163_v0, 0.0  ;;  %v169_v3 = vsel %vm165_vm0, %v164_v1, 0.0  ;;  %v213_v14 = vld [vmem:[%s3807_s4] sm:$0xff]  ;;  %v214_v15 = vld [vmem:[%s3807_s4 + $0x8] sm:$0xff]  ;;  %2767 = vmatprep.subr.bf16.mxu1 %v3278_v17  ;;  %v215_v21 = vld [vmem:[%s3807_s4 + $0x10] sm:$0xff]  ;;  %vm3279_vm1 = vmmov 0  }
  0xa6   :  { %167 = vadd.xlane.f32.xlu0 %v166_v2  ;;  %v211_v16 = vld [vmem:[#allocation8] sm:$0xff]  ;;  %v3495_v18 = vpack.c.bf16 %v214_v15, %v213_v14  ;;  %v212_v19 = vld [vmem:[#allocation8 + $0x8] sm:$0xff]  ;;  %v216_v22 = vld [vmem:[%s3807_s4 + $0x18] sm:$0xff]  ;;  %v3280_v24 = vmov 0.0   ;;  %s3282_s18 = smov 32   ;;  %vm408_vm2 = vcmask 254976  }
  0xa7   :  { %v2763_v20 = vpack.c.bf16 %v212_v19, %v211_v16  ;;  %v3506_v23 = vpack.c.bf16 %v216_v22, %v215_v21  ;;  %2555 = vmatprep.mubr.msk.f32.mxu1 %vm3279_vm1, %v3280_v24  ;;  %v2393_v32 = vld [vmem:[%s3804_s1] ss:$0 sm:$0xff]  ;;  %v2395_v43 = vld [vmem:[#allocation9] ss:$0 sm:$0xff]  ;;  %s3281_s1 = smov 64   ;;  %vm305_vm3 = vcmask 261120  }
  0xa8   :  { %2769 = vmatpush3.bf16.msra.mxu1 %v3495_v18  ;;  %v2394_v34 = vld [vmem:[#allocation6] ss:$0 sm:$0xff]  ;;  %vm517_vm4 = vcmask 257026   ;;  %vm741_vm5 = vcmask 261126   ;;  %vm629_vm6 = vcmask 259076   ;;  %s3283_s19 = smov [#allocation18]  }
  0xa9   :  { %2764 = vmatprep.subr.bf16.mxu0 %v2763_v20  ;;  %2770 = vmatprep.subr.bf16.mxu1 %v3278_v17  ;;  %s2380_s29 = sshll.u32 %s3283_s19, 4  ;;  %s2381_s29 = int_to_ptr.vmem [resolvable:$true] %s2380_s29 }
  0xaa   :  { %170 = vadd.xlane.f32.xlu0 %v169_v3  ;;  %2766 = vmatpush3.bf16.msra.mxu0 %v2763_v20  ;;  %p3238_p3 = scmp.lt.s32.totalorder %s2381_s29, %s2381_s29 }
  0xab   :  { %2773 = vmatprep.subr.bf16.mxu0 %v3278_v17 }
  0xac   :  { %2772 = vmatpush3.bf16.msra.mxu1 %v3506_v23 }
  0xad   :  { %2779 = vmatprep.subr.bf16.mxu1 %v3278_v17 }
  0xaf   :  { %2556 = vmatmul.mubr.f32.vlgmr.msra.gmra.mrb[0].mxu1 %v3280_v24 }
  0xb0   :  { %2781 = vmatpush3.bf16.msra.mxu1 %v3495_v18  ;;  %2577 = vmatprep.mubr.msk.f32.mxu1 %vm3279_vm1, %v3280_v24 }
  0xb1   :  { %2782 = vmatprep.subr.bf16.mxu1 %v3278_v17 }
  0xb4   :  { %2784 = vmatpush3.bf16.msra.mxu1 %v3506_v23 }
  0xb5   :  { %2791 = vmatprep.subr.bf16.mxu1 %v3278_v17 }
 0x133   :  { %v168_v4 = vpop.xlane.xlu0 %167 }
 0x134   :  { %v173_v5 = vmul.f32 0.0625, %v168_v4 }
 0x136   :  { %v175_v6 = vsub.f32 %v163_v0, %v173_v5 }
 0x137   :  { %v171_v7 = vpop.xlane.xlu0 %170 }
 0x138   :  { %v174_v8 = vmul.f32 0.0625, %v171_v7  ;;  %v177_v9 = vmul.f32 %v175_v6, %v175_v6 }
 0x13a   :  { %v176_v10 = vsub.f32 %v164_v1, %v174_v8  ;;  %v179_v11 = vsel %vm165_vm0, %v177_v9, 0.0 }
 0x13b   :  { %180 = vadd.xlane.f32.xlu1 %v179_v11 }
 0x13c   :  { %v178_v12 = vmul.f32 %v176_v10, %v176_v10 }
 0x13e   :  { %v182_v13 = vsel %vm165_vm0, %v178_v12, 0.0 }
 0x13f   :  { %183 = vadd.xlane.f32.xlu1 %v182_v13 }
 0x182   :  { %v375_v41 = vpop.f32.mrb[0].mxu1 }
 0x183   :  { %v2557_v42 = vpop.f32.mrb[1].mxu1 }
 0x1c8   :  { %v181_v25 = vpop.xlane.xlu1 %180 }
 0x1c9   :  { %v185_v26 = vmul.f32 0.0625, %v181_v25 }
 0x1cb   :  { %v187_v27 = vadd.f32 1e-05, %v185_v26 }
 0x1cc   :  { %v184_v28 = vpop.xlane.xlu1 %183 }
 0x1cd   :  { %2903 = vrsqrt.f32 %v187_v27  ;;  %v186_v29 = vmul.f32 0.0625, %v184_v28 }
 0x1cf   :  { %v188_v30 = vadd.f32 1e-05, %v186_v29 }
 0x1d1   :  { %2905 = vrsqrt.f32 %v188_v30 }
 0x1d7   :  { %v2904_v31 = vpop.eup %2903 }
 0x1d8   :  { %v191_v33 = vmul.f32 %v2904_v31, %v175_v6 }
 0x1da   :  { %v200_v35 = vmul.f32 %v2393_v32, %v191_v33 }
 0x1db   :  { %v2906_v36 = vpop.eup %2905 }
 0x1dc   :  { %v192_v37 = vmul.f32 %v2906_v36, %v176_v10  ;;  %v209_v38 = vadd.f32 %v2394_v34, %v200_v35 }
 0x1de   :  { %v201_v39 = vmul.f32 %v2393_v32, %v192_v37  ;;  %2544 = vmatprep.mubr.msk.f32.mxu0 %vm165_vm0, %v209_v38 }
 0x1e0   :  { %v210_v40 = vadd.f32 %v2394_v34, %v201_v39 }
 0x1e2   :  { %2545 = vmatmul.mubr.msk.f32.vlgmr.msra.gmra.mrb[0].mxu0 %vm165_vm0, %v210_v40 }
 0x1e3   :  { %2775 = vmatpush3.bf16.msra.mxu0 %v3495_v18  ;;  %2566 = vmatprep.mubr.msk.f32.mxu0 %vm3279_vm1, %v3280_v24 }
 0x1e4   :  { %2776 = vmatprep.subr.bf16.mxu0 %v3278_v17 }
 0x1e7   :  { %2778 = vmatpush3.bf16.msra.mxu0 %v3506_v23 }
 0x1e8   :  { %2785 = vmatprep.subr.bf16.mxu0 %v3278_v17 }
 0x2b5   :  { %v2546_v44 = vpop.f32.mrb[0].mxu0 }
 0x2b6   :  { %v3530_v45 = vadd.f32 %v2546_v44, %v2395_v43  ;;  %v296_v46 = vpop.f32.mrb[1].mxu0 }
 0x2b7   :  { %v3532_v47 = vadd.f32 %v2395_v43, %v296_v46 }
 0x2b9   :  { %v379_v48 = vadd.f32 %v375_v41, %v3532_v47 }
 0x2bb   :  { %2907 = vtanh.f32 %v379_v48  ;;  %v2398_v50 = vmul.f32 -1.442695, %v379_v48 }
 0x2bd   :  { %2909 = vpow2.f32 %v2398_v50 }
 0x2c5   :  { %v2908_v49 = vpop.eup %2907 }
 0x2c6   :  { %389 = vrot.lane.b32.xlu0 %v2908_v49, %s3281_s1 }
 0x2c7   :  { %v2910_v51 = vpop.eup %2909 }
 0x2c8   :  { %v383_v52 = vadd.f32 1.0, %v2910_v51 }
 0x2ca   :  { %2911 = vrcp.f32 %v383_v52 }
 0x2d4   :  { %v2912_v53 = vpop.eup %2911 }
 0x2d5   :  { %v387_v56 = vmul.f32 0.0, %v2912_v53 }
 0x338   :  { %v390_v54 = vpop.permute.xlu0 %389 }
 0x339   :  { %v392_v55 = vmul.f32 %v2912_v53, %v390_v54 }
 0x33b   :  { %394 = vrot.lane.b32.xlu1 %v392_v55, %s3282_s18 }
 0x3ad   :  { %v395_v57 = vpop.permute.xlu1 %394 }
 0x3ae   :  { %v397_v58 = vadd.f32 %v395_v57, %v387_v56 }
 0x3b0   :  { %2913 = vtanh.f32 %v397_v58  ;;  %v494_v10 = vrot.slane %v397_v58, 6 }
 0x3ba   :  { %v2914_v59 = vpop.eup %2913 }
 0x3bb   :  { %400 = vrot.lane.b32.xlu1 %v2914_v59, %s3281_s1 }
 0x42d   :  { %v401_v60 = vpop.permute.xlu1 %400 }
 0x42e   :  { %v403_v61 = vmul.f32 %v2912_v53, %v401_v60 }
 0x430   :  { %405 = vrot.lane.b32.xlu1 %v403_v61, %s3282_s18 }
 0x4a2   :  { %v406_v62 = vpop.permute.xlu1 %405 }
 0x4a3   :  { %409 = vst.msk [vmem:[#allocation2] sm:$0x3] %vm408_vm2, %v406_v62  ;;  %2567 = vmatmul.mubr.msk.f32.vlgmr.msra.gmra.mrb[2].mxu0 %vm305_vm3, %v406_v62 }
 0x4a4   :  { %2787 = vmatpush3.bf16.msra.mxu0 %v3495_v18  ;;  %2588 = vmatprep.mubr.msk.f32.mxu0 %vm3279_vm1, %v3280_v24 }
 0x4a5   :  { %2788 = vmatprep.subr.bf16.mxu0 %v3278_v17 }
 0x4a8   :  { %2790 = vmatpush3.bf16.msra.mxu0 %v3506_v23 }
 0x4a9   :  { %2797 = vmatprep.subr.bf16.mxu0 %v3278_v17 }
 0x576   :  { %v478_v63 = vpop.f32.mrb[2].mxu0 }
 0x577   :  { %v483_v0 = vrot.slane %v478_v63, 6  ;;  %v2568_v1 = vpop.f32.mrb[3].mxu0 }
 0x579   :  { %v485_v2 = vadd.f32 %v483_v0, %v3532_v47 }
 0x57b   :  { %2915 = vtanh.f32 %v485_v2  ;;  %v2400_v4 = vmul.f32 -1.442695, %v485_v2 }
 0x57d   :  { %2917 = vpow2.f32 %v2400_v4 }
 0x585   :  { %v2916_v3 = vpop.eup %2915 }
 0x586   :  { %498 = vrot.lane.b32.xlu0 %v2916_v3, %s3281_s1 }
 0x587   :  { %v2918_v5 = vpop.eup %2917 }
 0x588   :  { %v489_v6 = vadd.f32 1.0, %v2918_v5 }
 0x58a   :  { %2919 = vrcp.f32 %v489_v6 }
 0x594   :  { %v2920_v7 = vpop.eup %2919 }
 0x595   :  { %v496_v11 = vmul.f32 %v2920_v7, %v494_v10 }
 0x5f8   :  { %v499_v8 = vpop.permute.xlu0 %498 }
 0x5f9   :  { %v501_v9 = vmul.f32 %v2920_v7, %v499_v8 }
 0x5fb   :  { %503 = vrot.lane.b32.xlu1 %v501_v9, %s3282_s18 }
 0x66d   :  { %v504_v12 = vpop.permute.xlu1 %503 }
 0x66e   :  { %v506_v13 = vadd.f32 %v504_v12, %v496_v11 }
 0x670   :  { %2921 = vtanh.f32 %v506_v13  ;;  %v606_v34 = vrot.slane %v506_v13, 6 }
 0x67a   :  { %v2922_v14 = vpop.eup %2921 }
 0x67b   :  { %509 = vrot.lane.b32.xlu0 %v2922_v14, %s3281_s1 }
 0x6ed   :  { %v510_v15 = vpop.permute.xlu0 %509 }
 0x6ee   :  { %v3551_v16 = vmul.f32 %v2920_v7, %v510_v15 }
 0x6f0   :  { %v519_v19 = vrot.slane %v3551_v16, 2 }
 0x6f2   :  { %520 = vrot.lane.b32.xlu1 %v519_v19, %s3282_s18 }
 0x764   :  { %v521_v20 = vpop.permute.xlu1 %520 }
 0x765   :  { %2578 = vmatmul.mubr.msk.f32.vlgmr.msra.gmra.mrb[2].mxu1 %vm305_vm3, %v521_v20 }
 0x766   :  { %2793 = vmatpush3.bf16.msra.mxu1 %v3495_v18  ;;  %2599 = vmatprep.mubr.msk.f32.mxu1 %vm3279_vm1, %v3280_v24 }
 0x767   :  { %2794 = vmatprep.subr.bf16.mxu1 %v3278_v17 }
 0x76a   :  { %2796 = vmatpush3.bf16.msra.mxu1 %v3506_v23 }
 0x76b   :  { %2803 = vmatprep.subr.bf16.mxu1 %v3278_v17 }
 0x838   :  { %v590_v21 = vpop.f32.mrb[2].mxu1 }
 0x839   :  { %v595_v22 = vrot.slane %v590_v21, 4  ;;  %v2579_v25 = vpop.f32.mrb[3].mxu1 }
 0x83b   :  { %v597_v26 = vadd.f32 %v595_v22, %v3532_v47 }
 0x83d   :  { %2923 = vtanh.f32 %v597_v26  ;;  %v2402_v28 = vmul.f32 -1.442695, %v597_v26 }
 0x83f   :  { %2925 = vpow2.f32 %v2402_v28 }
 0x847   :  { %v2924_v27 = vpop.eup %2923 }
 0x848   :  { %610 = vrot.lane.b32.xlu0 %v2924_v27, %s3281_s1 }
 0x849   :  { %v2926_v29 = vpop.eup %2925 }
 0x84a   :  { %v601_v30 = vadd.f32 1.0, %v2926_v29 }
 0x84c   :  { %2927 = vrcp.f32 %v601_v30 }
 0x856   :  { %v2928_v31 = vpop.eup %2927 }
 0x857   :  { %v608_v35 = vmul.f32 %v2928_v31, %v606_v34 }
 0x8ba   :  { %v611_v32 = vpop.permute.xlu0 %610 }
 0x8bb   :  { %v613_v33 = vmul.f32 %v2928_v31, %v611_v32 }
 0x8bd   :  { %615 = vrot.lane.b32.xlu1 %v613_v33, %s3282_s18 }
 0x92f   :  { %v616_v36 = vpop.permute.xlu1 %615 }
 0x930   :  { %v618_v37 = vadd.f32 %v616_v36, %v608_v35 }
 0x932   :  { %2929 = vtanh.f32 %v618_v37  ;;  %v718_v56 = vrot.slane %v618_v37, 6 }
 0x93c   :  { %v2930_v38 = vpop.eup %2929 }
 0x93d   :  { %621 = vrot.lane.b32.xlu0 %v2930_v38, %s3281_s1 }
 0x9af   :  { %v622_v39 = vpop.permute.xlu0 %621 }
 0x9b0   :  { %v3566_v40 = vmul.f32 %v2928_v31, %v622_v39 }
 0x9b2   :  { %v631_v41 = vrot.slane %v3566_v40, 4 }
 0x9b4   :  { %632 = vrot.lane.b32.xlu1 %v631_v41, %s3282_s18 }
 0xa26   :  { %v633_v42 = vpop.permute.xlu1 %632 }
 0xa27   :  { %2589 = vmatmul.mubr.msk.f32.vlgmr.msra.gmra.mrb[4].mxu0 %vm305_vm3, %v633_v42 }
 0xa28   :  { %2799 = vmatpush3.bf16.msra.mxu0 %v3495_v18  ;;  %2610 = vmatprep.mubr.msk.f32.mxu0 %vm3279_vm1, %v3280_v24 }
 0xa29   :  { %2800 = vmatprep.subr.bf16.mxu0 %v3278_v17 }
 0xa2c   :  { %2802 = vmatpush3.bf16.msra.mxu0 %v3506_v23 }
 0xa2d   :  { %2809 = vmatprep.subr.bf16.mxu0 %v3278_v17 }
 0xafa   :  { %v702_v43 = vpop.f32.mrb[4].mxu0 }
 0xafb   :  { %v707_v44 = vrot.slane %v702_v43, 2  ;;  %v2590_v46 = vpop.f32.mrb[5].mxu0 }
 0xafd   :  { %v709_v48 = vadd.f32 %v707_v44, %v3532_v47 }
 0xaff   :  { %2931 = vtanh.f32 %v709_v48  ;;  %v2404_v50 = vmul.f32 -1.442695, %v709_v48 }
 0xb01   :  { %2933 = vpow2.f32 %v2404_v50 }
 0xb09   :  { %v2932_v49 = vpop.eup %2931 }
 0xb0a   :  { %722 = vrot.lane.b32.xlu0 %v2932_v49, %s3281_s1 }
 0xb0b   :  { %v2934_v51 = vpop.eup %2933 }
 0xb0c   :  { %v713_v52 = vadd.f32 1.0, %v2934_v51 }
 0xb0e   :  { %2935 = vrcp.f32 %v713_v52 }
 0xb18   :  { %v2936_v53 = vpop.eup %2935 }
 0xb19   :  { %v720_v57 = vmul.f32 %v2936_v53, %v718_v56 }
 0xb7c   :  { %v723_v54 = vpop.permute.xlu0 %722 }
 0xb7d   :  { %v725_v55 = vmul.f32 %v2936_v53, %v723_v54 }
 0xb7f   :  { %727 = vrot.lane.b32.xlu1 %v725_v55, %s3282_s18 }
 0xbf1   :  { %v728_v58 = vpop.permute.xlu1 %727 }
 0xbf2   :  { %v730_v59 = vadd.f32 %v728_v58, %v720_v57 }
 0xbf4   :  { %2937 = vtanh.f32 %v730_v59  ;;  %v827_v10 = vrot.slane %v730_v59, 6 }
 0xbfe   :  { %v2938_v47 = vpop.eup %2937 }
 0xbff   :  { %733 = vrot.lane.b32.xlu0 %v2938_v47, %s3281_s1 }
 0xc71   :  { %v734_v60 = vpop.permute.xlu0 %733 }
 0xc72   :  { %v3581_v61 = vmul.f32 %v2936_v53, %v734_v60 }
 0xc74   :  { %v743_v62 = vrot.slane %v3581_v61, 6 }
 0xc76   :  { %744 = vrot.lane.b32.xlu1 %v743_v62, %s3282_s18 }
 0xce8   :  { %v745_v63 = vpop.permute.xlu1 %744 }
 0xce9   :  { %2600 = vmatmul.mubr.msk.f32.vlgmr.msra.gmra.mrb[4].mxu1 %vm305_vm3, %v745_v63 }
 0xcea   :  { %2805 = vmatpush3.bf16.msra.mxu1 %v3495_v18  ;;  %2621 = vmatprep.mubr.msk.f32.mxu1 %vm3279_vm1, %v3280_v24 }
 0xceb   :  { %2806 = vmatprep.subr.bf16.mxu1 %v3278_v17 }
 0xcee   :  { %2808 = vmatpush3.bf16.msra.mxu1 %v3506_v23 }
 0xdbc   :  { %v814_v0 = vpop.f32.mrb[4].mxu1 }
 0xdbd   :  { %v818_v1 = vadd.f32 %v814_v0, %v3530_v45  ;;  %v2601_v2 = vpop.f32.mrb[5].mxu1 }
 0xdbf   :  { %2939 = vtanh.f32 %v818_v1  ;;  %v2406_v4 = vmul.f32 -1.442695, %v818_v1 }
 0xdc1   :  { %2941 = vpow2.f32 %v2406_v4 }
 0xdc9   :  { %v2940_v3 = vpop.eup %2939 }
 0xdca   :  { %831 = vrot.lane.b32.xlu0 %v2940_v3, %s3281_s1 }
 0xdcb   :  { %v2942_v5 = vpop.eup %2941 }
 0xdcc   :  { %v822_v6 = vadd.f32 1.0, %v2942_v5 }
 0xdce   :  { %2943 = vrcp.f32 %v822_v6 }
 0xdd8   :  { %v2944_v7 = vpop.eup %2943 }
 0xdd9   :  { %v829_v11 = vmul.f32 %v2944_v7, %v827_v10 }
 0xe3c   :  { %v832_v8 = vpop.permute.xlu0 %831 }
 0xe3d   :  { %v834_v9 = vmul.f32 %v2944_v7, %v832_v8 }
 0xe3f   :  { %836 = vrot.lane.b32.xlu1 %v834_v9, %s3282_s18 }
 0xeb1   :  { %v837_v12 = vpop.permute.xlu1 %836 }
 0xeb2   :  { %v839_v13 = vadd.f32 %v837_v12, %v829_v11 }
 0xeb4   :  { %2945 = vtanh.f32 %v839_v13 }
 0xebe   :  { %v2946_v14 = vpop.eup %2945 }
 0xebf   :  { %842 = vrot.lane.b32.xlu0 %v2946_v14, %s3281_s1 }
 0xf31   :  { %v843_v15 = vpop.permute.xlu0 %842 }
 0xf32   :  { %v845_v19 = vmul.f32 %v2944_v7, %v843_v15 }
 0xf34   :  { %847 = vrot.lane.b32.xlu1 %v845_v19, %s3282_s18 }
 0xfa6   :  { %v848_v20 = vpop.permute.xlu1 %847 }
 0xfa7   :  { %850 = vst.msk [vmem:[#allocation2 + $0x8] sm:$0x3] %vm408_vm2, %v848_v20  ;;  %2611 = vmatmul.mubr.msk.f32.vlgmr.msra.gmra.mrb[6].mxu0 %vm305_vm3, %v848_v20  ;;  %v1184_v20 = vld [vmem:[%s3809_s6 + $0x8] sm:$0xff] }
 0xfa8   :  { %2811 = vmatpush3.bf16.msra.mxu0 %v3495_v18  ;;  %2632 = vmatprep.mubr.msk.f32.mxu0 %vm3279_vm1, %v3280_v24 }
 0xfa9   :  { %2812 = vmatprep.subr.bf16.mxu0 %v3278_v17 }
 0xfac   :  { %2814 = vmatpush3.bf16.msra.mxu0 %v3506_v23  ;;  %v935_v23 = vrot.slane %v839_v13, 6 }
 0xfad   :  { %2823 = vmatprep.subr.bf16.mxu0 %v3278_v17 }
0x107a   :  { %v919_v21 = vpop.f32.mrb[6].mxu0 }
0x107b   :  { %v924_v22 = vrot.slane %v919_v21, 6  ;;  %v2612_v25 = vpop.f32.mrb[7].mxu0 }
0x107c   :  { %v1188_v25 = vld [vmem:[#allocation11 + $0x8] sm:$0xff] }
0x107d   :  { %v926_v26 = vadd.f32 %v924_v22, %v3530_v45  ;;  %v1187_v22 = vld [vmem:[#allocation11] sm:$0xff] }
0x107f   :  { %2947 = vtanh.f32 %v926_v26  ;;  %v2408_v28 = vmul.f32 -1.442695, %v926_v26  ;;  %v1185_v26 = vld [vmem:[%s3809_s6 + $0x10] sm:$0xff] }
0x1081   :  { %2949 = vpow2.f32 %v2408_v28  ;;  %v1189_v28 = vld [vmem:[#allocation11 + $0x10] sm:$0xff] }
0x1089   :  { %v2948_v27 = vpop.eup %2947 }
0x108a   :  { %939 = vrot.lane.b32.xlu0 %v2948_v27, %s3281_s1  ;;  %v1186_v27 = vld [vmem:[%s3809_s6 + $0x18] sm:$0xff] }
0x108b   :  { %v2950_v18 = vpop.eup %2949 }
0x108c   :  { %v930_v29 = vadd.f32 1.0, %v2950_v18  ;;  %v1190_v18 = vld [vmem:[#allocation11 + $0x18] sm:$0xff] }
0x108e   :  { %2951 = vrcp.f32 %v930_v29  ;;  %v2819_v29 = vpack.c.bf16 %v1186_v27, %v1185_v26 }
0x1098   :  { %v2952_v30 = vpop.eup %2951 }
0x1099   :  { %v937_v33 = vmul.f32 %v2952_v30, %v935_v23 }
0x10fc   :  { %v940_v31 = vpop.permute.xlu0 %939 }
0x10fd   :  { %v942_v32 = vmul.f32 %v2952_v30, %v940_v31 }
0x10ff   :  { %944 = vrot.lane.b32.xlu1 %v942_v32, %s3282_s18 }
0x1171   :  { %v945_v34 = vpop.permute.xlu1 %944 }
0x1172   :  { %v947_v35 = vadd.f32 %v945_v34, %v937_v33 }
0x1174   :  { %2953 = vtanh.f32 %v947_v35  ;;  %v1046_v55 = vrot.slane %v947_v35, 6 }
0x117e   :  { %v2954_v36 = vpop.eup %2953 }
0x117f   :  { %950 = vrot.lane.b32.xlu0 %v2954_v36, %s3281_s1 }
0x11f1   :  { %v951_v37 = vpop.permute.xlu0 %950 }
0x11f2   :  { %v3608_v38 = vmul.f32 %v2952_v30, %v951_v37  ;;  %v3652_v30 = vpack.c.bf16 %v1190_v18, %v1189_v28 }
0x11f4   :  { %v959_v39 = vrot.slane %v3608_v38, 2 }
0x11f6   :  { %960 = vrot.lane.b32.xlu1 %v959_v39, %s3282_s18  ;;  %v2413_v39 = vld [vmem:[#allocation12] ss:$0 sm:$0xff] }
0x1268   :  { %v961_v41 = vpop.permute.xlu1 %960 }
0x1269   :  { %2622 = vmatmul.mubr.msk.f32.vlgmr.msra.gmra.mrb[6].mxu1 %vm305_vm3, %v961_v41 }
0x133c   :  { %v1030_v42 = vpop.f32.mrb[6].mxu1 }
0x133d   :  { %v1035_v43 = vrot.slane %v1030_v42, 4  ;;  %v2623_v44 = vpop.f32.mrb[7].mxu1 }
0x133f   :  { %v1037_v46 = vadd.f32 %v1035_v43, %v3530_v45 }
0x1341   :  { %2955 = vtanh.f32 %v1037_v46  ;;  %v2410_v49 = vmul.f32 -1.442695, %v1037_v46 }
0x1343   :  { %2957 = vpow2.f32 %v2410_v49 }
0x134b   :  { %v2956_v48 = vpop.eup %2955 }
0x134c   :  { %1050 = vrot.lane.b32.xlu0 %v2956_v48, %s3281_s1 }
0x134d   :  { %v2958_v50 = vpop.eup %2957 }
0x134e   :  { %v1041_v51 = vadd.f32 1.0, %v2958_v50 }
0x1350   :  { %2959 = vrcp.f32 %v1041_v51 }
0x135a   :  { %v2960_v52 = vpop.eup %2959 }
0x135b   :  { %v1048_v56 = vmul.f32 %v2960_v52, %v1046_v55 }
0x13be   :  { %v1051_v53 = vpop.permute.xlu0 %1050 }
0x13bf   :  { %v1053_v54 = vmul.f32 %v2960_v52, %v1051_v53 }
0x13c1   :  { %1055 = vrot.lane.b32.xlu1 %v1053_v54, %s3282_s18 }
0x1433   :  { %v1056_v57 = vpop.permute.xlu1 %1055 }
0x1434   :  { %v1058_v58 = vadd.f32 %v1056_v57, %v1048_v56 }
0x1436   :  { %2961 = vtanh.f32 %v1058_v58 }
0x1440   :  { %v2962_v59 = vpop.eup %2961 }
0x1441   :  { %1061 = vrot.lane.b32.xlu0 %v2962_v59, %s3281_s1 }
0x14b3   :  { %v1062_v47 = vpop.permute.xlu0 %1061 }
0x14b4   :  { %v1064_v60 = vmul.f32 %v2960_v52, %v1062_v47 }
0x14b6   :  { %v1070_v62 = vrot.slane %v1064_v60, 4 }
0x14b8   :  { %1071 = vrot.lane.b32.xlu1 %v1070_v62, %s3282_s18 }
0x152a   :  { %v1072_v63 = vpop.permute.xlu1 %1071 }
0x152b   :  { %2633 = vmatmul.mubr.msk.f32.vlgmr.msra.gmra.mrb[8].mxu0 %vm305_vm3, %v1072_v63 }
0x152c   :  { %2654 = vmatprep.mubr.msk.f32.mxu0 %vm3279_vm1, %v3280_v24 }
0x15fe   :  { %v1141_v0 = vpop.f32.mrb[8].mxu0 }
0x15ff   :  { %v1146_v1 = vrot.slane %v1141_v0, 2  ;;  %v2634_v2 = vpop.f32.mrb[9].mxu0 }
0x1601   :  { %v1148_v3 = vadd.f32 %v1146_v1, %v3530_v45  ;;  %v1157_v45 = vrot.slane %v1058_v58, 6 }
0x1603   :  { %2963 = vtanh.f32 %v1148_v3  ;;  %v2412_v5 = vmul.f32 -1.442695, %v1148_v3 }
0x1605   :  { %2965 = vpow2.f32 %v2412_v5 }
0x160d   :  { %v2964_v4 = vpop.eup %2963 }
0x160e   :  { %1161 = vrot.lane.b32.xlu0 %v2964_v4, %s3281_s1 }
0x160f   :  { %v2966_v6 = vpop.eup %2965 }
0x1610   :  { %v1152_v7 = vadd.f32 1.0, %v2966_v6 }
0x1612   :  { %2967 = vrcp.f32 %v1152_v7 }
0x161c   :  { %v2968_v8 = vpop.eup %2967 }
0x161d   :  { %v1159_v11 = vmul.f32 %v2968_v8, %v1157_v45 }
0x1680   :  { %v1162_v9 = vpop.permute.xlu0 %1161 }
0x1681   :  { %v1164_v10 = vmul.f32 %v2968_v8, %v1162_v9 }
0x1683   :  { %1166 = vrot.lane.b32.xlu1 %v1164_v10, %s3282_s18 }
0x1687   :  { %514 = vrot.lane.b32.xlu1 %v3551_v16, %s3282_s18 }
0x168b   :  { %738 = vrot.lane.b32.xlu1 %v3581_v61, %s3282_s18  ;;  %v1183_v61 = vld [vmem:[%s3809_s6] sm:$0xff] }
0x168c   :  { %v2815_v21 = vpack.c.bf16 %v1184_v20, %v1183_v61 }
0x168e   :  { %2816 = vmatprep.subr.bf16.mxu1 %v2815_v21 }
0x168f   :  { %1066 = vrot.lane.b32.xlu1 %v1064_v60, %s3282_s18  ;;  %2818 = vmatpush3.bf16.msra.mxu1 %v2815_v21 }
0x1690   :  { %2820 = vmatprep.subr.bf16.mxu1 %v2819_v29 }
0x1693   :  { %2822 = vmatpush3.bf16.msra.mxu1 %v2819_v29 }
0x1694   :  { %2829 = vmatprep.subr.bf16.mxu1 %v3278_v17 }
0x16f5   :  { %v1167_v12 = vpop.permute.xlu1 %1166 }
0x16f6   :  { %v1169_v13 = vadd.f32 %v1167_v12, %v1159_v11 }
0x16f8   :  { %2969 = vtanh.f32 %v1169_v13 }
0x16f9   :  { %v515_v14 = vpop.permute.xlu1 %514 }
0x16fa   :  { %518 = vst.msk [vmem:[#allocation2] sm:$0xc] %vm517_vm4, %v515_v14 }
0x16fd   :  { %v739_v15 = vpop.permute.xlu1 %738 }
0x16fe   :  { %742 = vst.msk [vmem:[#allocation2] sm:$0xc0] %vm741_vm5, %v739_v15 }
0x1701   :  { %v1067_v16 = vpop.permute.xlu1 %1066 }
0x1702   :  { %v2970_v19 = vpop.eup %2969  ;;  %1069 = vst.msk [vmem:[#allocation2 + $0x8] sm:$0x30] %vm629_vm6, %v1067_v16 }
0x1703   :  { %1172 = vrot.lane.b32.xlu0 %v2970_v19, %s3281_s1 }
0x1707   :  { %626 = vrot.lane.b32.xlu0 %v3566_v40, %s3282_s18  ;;  %v3646_v40 = vpack.c.bf16 %v1188_v25, %v1187_v22 }
0x1709   :  { %2825 = vmatpush3.bf16.msra.mxu0 %v3646_v40 }
0x170a   :  { %2826 = vmatprep.subr.bf16.mxu0 %v3278_v17 }
0x170b   :  { %955 = vrot.lane.b32.xlu0 %v3608_v38, %s3282_s18 }
0x170d   :  { %2828 = vmatpush3.bf16.msra.mxu0 %v3652_v30 }
0x170e   :  { %2835 = vmatprep.subr.bf16.mxu0 %v3278_v17 }
0x1710   :  { %2655 = vmatmul.mubr.f32.vlgmr.msra.gmra.mrb[10].mxu0 %v3280_v24 }
0x1711   :  { %2837 = vmatpush3.bf16.msra.mxu0 %v3646_v40  ;;  %2676 = vmatprep.mubr.msk.f32.mxu0 %vm3279_vm1, %v3280_v24 }
0x1712   :  { %2838 = vmatprep.subr.bf16.mxu0 %v3278_v17 }
0x1715   :  { %2840 = vmatpush3.bf16.msra.mxu0 %v3652_v30 }
0x1716   :  { %2847 = vmatprep.subr.bf16.mxu0 %v3278_v17 }
0x1775   :  { %v1173_v31 = vpop.permute.xlu0 %1172 }
0x1776   :  { %v1175_v32 = vmul.f32 %v2968_v8, %v1173_v31 }
0x1778   :  { %1177 = vrot.lane.b32.xlu0 %v1175_v32, %s3282_s18 }
0x1779   :  { %v627_v23 = vpop.permute.xlu0 %626 }
0x177a   :  { %630 = vst.msk [vmem:[#allocation2] sm:$0x30] %vm629_vm6, %v627_v23 }
0x177d   :  { %v956_v33 = vpop.permute.xlu0 %955 }
0x177e   :  { %958 = vst.msk [vmem:[#allocation2 + $0x8] sm:$0xc] %vm517_vm4, %v956_v33 }
0x1781   :  { %v1181_v34 = vld [vmem:[#allocation2] sm:$0xff] }
0x1782   :  { %2643 = vmatprep.mubr.msk.f32.mxu1 %vm305_vm3, %v1181_v34 }
0x17e3   :  { %v1345_v37 = vpop.f32.mrb[10].mxu0 }
0x17e4   :  { %v2656_v38 = vpop.f32.mrb[11].mxu0 }
0x17ea   :  { %v1178_v35 = vpop.permute.xlu0 %1177 }
0x17eb   :  { %1180 = vst.msk [vmem:[#allocation2 + $0x8] sm:$0xc0] %vm741_vm5, %v1178_v35 }
0x17f2   :  { %v1182_v36 = vld [vmem:[#allocation2 + $0x8] sm:$0xff] }
0x17f3   :  { %2644 = vmatmul.mubr.msk.f32.vlgmr.msra.gmra.mrb[8].mxu1 %vm305_vm3, %v1182_v36 }
0x17f4   :  { %2831 = vmatpush3.bf16.msra.mxu1 %v3646_v40  ;;  %2665 = vmatprep.mubr.msk.f32.mxu1 %vm3279_vm1, %v3280_v24 }
0x17f5   :  { %2832 = vmatprep.subr.bf16.mxu1 %v3278_v17 }
0x17f8   :  { %2834 = vmatpush3.bf16.msra.mxu1 %v3652_v30 }
0x17f9   :  { %2841 = vmatprep.subr.bf16.mxu1 %v3278_v17 }
0x18c6   :  { %v2645_v41 = vpop.f32.mrb[8].mxu1 }
0x18c7   :  { %v3677_v42 = vadd.f32 %v2645_v41, %v2413_v39  ;;  %v1270_v43 = vpop.f32.mrb[9].mxu1 }
0x18c8   :  { %v3679_v44 = vadd.f32 %v2413_v39, %v1270_v43 }
0x18ca   :  { %v1349_v46 = vadd.f32 %v1345_v37, %v3679_v44 }
0x18cc   :  { %2971 = vtanh.f32 %v1349_v46  ;;  %v2416_v49 = vmul.f32 -1.442695, %v1349_v46 }
0x18ce   :  { %2973 = vpow2.f32 %v2416_v49 }
0x18d6   :  { %v2972_v48 = vpop.eup %2971 }
0x18d7   :  { %1359 = vrot.lane.b32.xlu1 %v2972_v48, %s3281_s1 }
0x18d8   :  { %v2974_v50 = vpop.eup %2973 }
0x18d9   :  { %v1353_v51 = vadd.f32 1.0, %v2974_v50 }
0x18db   :  { %2975 = vrcp.f32 %v1353_v51 }
0x18e5   :  { %v2976_v52 = vpop.eup %2975 }
0x18e6   :  { %v1357_v55 = vmul.f32 0.0, %v2976_v52 }
0x1949   :  { %v1360_v53 = vpop.permute.xlu1 %1359 }
0x194a   :  { %v1362_v54 = vmul.f32 %v2976_v52, %v1360_v53 }
0x194c   :  { %1364 = vrot.lane.b32.xlu0 %v1362_v54, %s3282_s18 }
0x19be   :  { %v1365_v56 = vpop.permute.xlu0 %1364 }
0x19bf   :  { %v1367_v57 = vadd.f32 %v1365_v56, %v1357_v55 }
0x19c1   :  { %2977 = vtanh.f32 %v1367_v57  ;;  %v1461_v9 = vrot.slane %v1367_v57, 6 }
0x19cb   :  { %v2978_v58 = vpop.eup %2977 }
0x19cc   :  { %1370 = vrot.lane.b32.xlu1 %v2978_v58, %s3281_s1 }
0x1a3e   :  { %v1371_v59 = vpop.permute.xlu1 %1370 }
0x1a3f   :  { %v1373_v47 = vmul.f32 %v2976_v52, %v1371_v59 }
0x1a41   :  { %1375 = vrot.lane.b32.xlu0 %v1373_v47, %s3282_s18 }
0x1ab3   :  { %v1376_v60 = vpop.permute.xlu0 %1375 }
0x1ab4   :  { %2666 = vmatmul.mubr.msk.f32.vlgmr.msra.gmra.mrb[10].mxu1 %vm305_vm3, %v1376_v60 }
0x1ab5   :  { %2843 = vmatpush3.bf16.msra.mxu1 %v3646_v40  ;;  %2687 = vmatprep.mubr.msk.f32.mxu1 %vm3279_vm1, %v3280_v24 }
0x1ab6   :  { %2844 = vmatprep.subr.bf16.mxu1 %v3278_v17 }
0x1ab9   :  { %2846 = vmatpush3.bf16.msra.mxu1 %v3652_v30 }
0x1aba   :  { %2853 = vmatprep.subr.bf16.mxu1 %v3278_v17 }
0x1b87   :  { %v1445_v62 = vpop.f32.mrb[10].mxu1 }
0x1b88   :  { %v1450_v63 = vrot.slane %v1445_v62, 6  ;;  %v2667_v0 = vpop.f32.mrb[11].mxu1 }
0x1b8a   :  { %v1452_v1 = vadd.f32 %v1450_v63, %v3679_v44 }
0x1b8c   :  { %2979 = vtanh.f32 %v1452_v1  ;;  %v2418_v3 = vmul.f32 -1.442695, %v1452_v1 }
0x1b8e   :  { %2981 = vpow2.f32 %v2418_v3 }
0x1b96   :  { %v2980_v2 = vpop.eup %2979 }
0x1b97   :  { %1465 = vrot.lane.b32.xlu1 %v2980_v2, %s3281_s1 }
0x1b98   :  { %v2982_v4 = vpop.eup %2981 }
0x1b99   :  { %v1456_v5 = vadd.f32 1.0, %v2982_v4 }
0x1b9b   :  { %2983 = vrcp.f32 %v1456_v5 }
0x1ba5   :  { %v2984_v6 = vpop.eup %2983 }
0x1ba6   :  { %v1463_v10 = vmul.f32 %v2984_v6, %v1461_v9 }
0x1c09   :  { %v1466_v7 = vpop.permute.xlu1 %1465 }
0x1c0a   :  { %v1468_v8 = vmul.f32 %v2984_v6, %v1466_v7 }
0x1c0c   :  { %1470 = vrot.lane.b32.xlu0 %v1468_v8, %s3282_s18 }
0x1c7e   :  { %v1471_v45 = vpop.permute.xlu0 %1470 }
0x1c7f   :  { %v1473_v11 = vadd.f32 %v1471_v45, %v1463_v10 }
0x1c81   :  { %2985 = vtanh.f32 %v1473_v11  ;;  %v1568_v31 = vrot.slane %v1473_v11, 6 }
0x1c8b   :  { %v2986_v12 = vpop.eup %2985 }
0x1c8c   :  { %1476 = vrot.lane.b32.xlu1 %v2986_v12, %s3281_s1 }
0x1cfe   :  { %v1477_v13 = vpop.permute.xlu1 %1476 }
0x1cff   :  { %v1479_v14 = vmul.f32 %v2984_v6, %v1477_v13 }
0x1d01   :  { %v1481_v15 = vrot.slane %v1479_v14, 2 }
0x1d03   :  { %1482 = vrot.lane.b32.xlu0 %v1481_v15, %s3282_s18 }
0x1d75   :  { %v1483_v16 = vpop.permute.xlu0 %1482 }
0x1d76   :  { %2677 = vmatmul.mubr.msk.f32.vlgmr.msra.gmra.mrb[12].mxu0 %vm305_vm3, %v1483_v16 }
0x1d77   :  { %2849 = vmatpush3.bf16.msra.mxu0 %v3646_v40  ;;  %2698 = vmatprep.mubr.msk.f32.mxu0 %vm3279_vm1, %v3280_v24 }
0x1d78   :  { %2850 = vmatprep.subr.bf16.mxu0 %v3278_v17 }
0x1d7b   :  { %2852 = vmatpush3.bf16.msra.mxu0 %v3652_v30 }
0x1d7c   :  { %2859 = vmatprep.subr.bf16.mxu0 %v3278_v17 }
0x1e49   :  { %v1552_v19 = vpop.f32.mrb[12].mxu0 }
0x1e4a   :  { %v1557_v61 = vrot.slane %v1552_v19, 4  ;;  %v2678_v20 = vpop.f32.mrb[13].mxu0 }
0x1e4c   :  { %v1559_v21 = vadd.f32 %v1557_v61, %v3679_v44 }
0x1e4e   :  { %2987 = vtanh.f32 %v1559_v21  ;;  %v2420_v25 = vmul.f32 -1.442695, %v1559_v21 }
0x1e50   :  { %2989 = vpow2.f32 %v2420_v25 }
0x1e58   :  { %v2988_v22 = vpop.eup %2987 }
0x1e59   :  { %1572 = vrot.lane.b32.xlu1 %v2988_v22, %s3281_s1 }
0x1e5a   :  { %v2990_v26 = vpop.eup %2989 }
0x1e5b   :  { %v1563_v27 = vadd.f32 1.0, %v2990_v26 }
0x1e5d   :  { %2991 = vrcp.f32 %v1563_v27 }
0x1e67   :  { %v2992_v28 = vpop.eup %2991 }
0x1e68   :  { %v1570_v32 = vmul.f32 %v2992_v28, %v1568_v31 }
0x1ecb   :  { %v1573_v18 = vpop.permute.xlu1 %1572 }
0x1ecc   :  { %v1575_v29 = vmul.f32 %v2992_v28, %v1573_v18 }
0x1ece   :  { %1577 = vrot.lane.b32.xlu0 %v1575_v29, %s3282_s18 }
0x1f40   :  { %v1578_v23 = vpop.permute.xlu0 %1577 }
0x1f41   :  { %v1580_v33 = vadd.f32 %v1578_v23, %v1570_v32 }
0x1f43   :  { %2993 = vtanh.f32 %v1580_v33  ;;  %v1675_v55 = vrot.slane %v1580_v33, 6 }
0x1f4d   :  { %v2994_v34 = vpop.eup %2993 }
0x1f4e   :  { %1583 = vrot.lane.b32.xlu1 %v2994_v34, %s3281_s1 }
0x1fc0   :  { %v1584_v35 = vpop.permute.xlu1 %1583 }
0x1fc1   :  { %v1586_v36 = vmul.f32 %v2992_v28, %v1584_v35 }
0x1fc3   :  { %v1588_v37 = vrot.slane %v1586_v36, 4 }
0x1fc5   :  { %1589 = vrot.lane.b32.xlu0 %v1588_v37, %s3282_s18 }
0x2037   :  { %v1590_v38 = vpop.permute.xlu0 %1589 }
0x2038   :  { %2688 = vmatmul.mubr.msk.f32.vlgmr.msra.gmra.mrb[12].mxu1 %vm305_vm3, %v1590_v38 }
0x2039   :  { %2855 = vmatpush3.bf16.msra.mxu1 %v3646_v40  ;;  %2709 = vmatprep.mubr.msk.f32.mxu1 %vm3279_vm1, %v3280_v24 }
0x203a   :  { %2856 = vmatprep.subr.bf16.mxu1 %v3278_v17 }
0x203d   :  { %2858 = vmatpush3.bf16.msra.mxu1 %v3652_v30 }
0x203e   :  { %2865 = vmatprep.subr.bf16.mxu1 %v3278_v17 }
0x210b   :  { %v1659_v39 = vpop.f32.mrb[12].mxu1 }
0x210c   :  { %v1664_v41 = vrot.slane %v1659_v39, 2  ;;  %v2689_v43 = vpop.f32.mrb[13].mxu1 }
0x210e   :  { %v1666_v46 = vadd.f32 %v1664_v41, %v3679_v44 }
0x2110   :  { %2995 = vtanh.f32 %v1666_v46  ;;  %v2422_v49 = vmul.f32 -1.442695, %v1666_v46 }
0x2112   :  { %2997 = vpow2.f32 %v2422_v49 }
0x211a   :  { %v2996_v48 = vpop.eup %2995 }
0x211b   :  { %1679 = vrot.lane.b32.xlu1 %v2996_v48, %s3281_s1 }
0x211c   :  { %v2998_v50 = vpop.eup %2997 }
0x211d   :  { %v1670_v51 = vadd.f32 1.0, %v2998_v50 }
0x211f   :  { %2999 = vrcp.f32 %v1670_v51 }
0x2129   :  { %v3000_v52 = vpop.eup %2999 }
0x212a   :  { %v1677_v56 = vmul.f32 %v3000_v52, %v1675_v55 }
0x218d   :  { %v1680_v53 = vpop.permute.xlu1 %1679 }
0x218e   :  { %v1682_v54 = vmul.f32 %v3000_v52, %v1680_v53 }
0x2190   :  { %1684 = vrot.lane.b32.xlu0 %v1682_v54, %s3282_s18 }
0x2202   :  { %v1685_v57 = vpop.permute.xlu0 %1684 }
0x2203   :  { %v1687_v58 = vadd.f32 %v1685_v57, %v1677_v56 }
0x2205   :  { %3001 = vtanh.f32 %v1687_v58  ;;  %v1779_v9 = vrot.slane %v1687_v58, 6 }
0x220f   :  { %v3002_v44 = vpop.eup %3001 }
0x2210   :  { %1690 = vrot.lane.b32.xlu1 %v3002_v44, %s3281_s1 }
0x2282   :  { %v1691_v59 = vpop.permute.xlu1 %1690 }
0x2283   :  { %v1693_v47 = vmul.f32 %v3000_v52, %v1691_v59 }
0x2285   :  { %v1695_v60 = vrot.slane %v1693_v47, 6 }
0x2287   :  { %1696 = vrot.lane.b32.xlu0 %v1695_v60, %s3282_s18 }
0x22f9   :  { %v1697_v62 = vpop.permute.xlu0 %1696 }
0x22fa   :  { %2699 = vmatmul.mubr.msk.f32.vlgmr.msra.gmra.mrb[14].mxu0 %vm305_vm3, %v1697_v62 }
0x22fb   :  { %2861 = vmatpush3.bf16.msra.mxu0 %v3646_v40  ;;  %2720 = vmatprep.mubr.msk.f32.mxu0 %vm3279_vm1, %v3280_v24 }
0x22fc   :  { %2862 = vmatprep.subr.bf16.mxu0 %v3278_v17 }
0x22ff   :  { %2864 = vmatpush3.bf16.msra.mxu0 %v3652_v30 }
0x2300   :  { %2871 = vmatprep.subr.bf16.mxu0 %v3278_v17 }
0x23cd   :  { %v1766_v63 = vpop.f32.mrb[14].mxu0 }
0x23ce   :  { %v1770_v0 = vadd.f32 %v1766_v63, %v3677_v42  ;;  %v2700_v1 = vpop.f32.mrb[15].mxu0 }
0x23d0   :  { %3003 = vtanh.f32 %v1770_v0  ;;  %v2424_v3 = vmul.f32 -1.442695, %v1770_v0 }
0x23d2   :  { %3005 = vpow2.f32 %v2424_v3 }
0x23da   :  { %v3004_v2 = vpop.eup %3003 }
0x23db   :  { %1783 = vrot.lane.b32.xlu1 %v3004_v2, %s3281_s1 }
0x23dc   :  { %v3006_v4 = vpop.eup %3005 }
0x23dd   :  { %v1774_v5 = vadd.f32 1.0, %v3006_v4 }
0x23df   :  { %3007 = vrcp.f32 %v1774_v5 }
0x23e9   :  { %v3008_v6 = vpop.eup %3007 }
0x23ea   :  { %v1781_v10 = vmul.f32 %v3008_v6, %v1779_v9 }
0x244d   :  { %v1784_v7 = vpop.permute.xlu1 %1783 }
0x244e   :  { %v1786_v8 = vmul.f32 %v3008_v6, %v1784_v7 }
0x2450   :  { %1788 = vrot.lane.b32.xlu0 %v1786_v8, %s3282_s18 }
0x24c2   :  { %v1789_v45 = vpop.permute.xlu0 %1788 }
0x24c3   :  { %v1791_v11 = vadd.f32 %v1789_v45, %v1781_v10  ;;  %v2119_v45 = vld [vmem:[#allocation14 + $0x8] sm:$0xff] }
0x24c5   :  { %3009 = vtanh.f32 %v1791_v11 }
0x24cf   :  { %v3010_v12 = vpop.eup %3009 }
0x24d0   :  { %1794 = vrot.lane.b32.xlu1 %v3010_v12, %s3281_s1 }
0x2542   :  { %v1795_v13 = vpop.permute.xlu1 %1794 }
0x2543   :  { %v1797_v14 = vmul.f32 %v3008_v6, %v1795_v13  ;;  %v2121_v13 = vld [vmem:[#allocation14 + $0x18] sm:$0xff] }
0x2545   :  { %1799 = vrot.lane.b32.xlu0 %v1797_v14, %s3282_s18 }
0x25b7   :  { %v1800_v15 = vpop.permute.xlu0 %1799 }
0x25b8   :  { %2710 = vmatmul.mubr.msk.f32.vlgmr.msra.gmra.mrb[14].mxu1 %vm305_vm3, %v1800_v15 }
0x25b9   :  { %2867 = vmatpush3.bf16.msra.mxu1 %v3646_v40  ;;  %2731 = vmatprep.mubr.msk.f32.mxu1 %vm3279_vm1, %v3280_v24 }
0x25ba   :  { %2868 = vmatprep.subr.bf16.mxu1 %v3278_v17 }
0x25bd   :  { %2870 = vmatpush3.bf16.msra.mxu1 %v3652_v30  ;;  %v1885_v30 = vrot.slane %v1791_v11, 6  ;;  %v2120_v11 = vld [vmem:[#allocation14 + $0x10] sm:$0xff] }
0x25be   :  { %2877 = vmatprep.subr.bf16.mxu1 %v3278_v17  ;;  %v2875_v14 = vpack.c.bf16 %v2121_v13, %v2120_v11 }
0x268b   :  { %v1869_v16 = vpop.f32.mrb[14].mxu1 }
0x268c   :  { %v1874_v19 = vrot.slane %v1869_v16, 6  ;;  %v2711_v61 = vpop.f32.mrb[15].mxu1  ;;  %v2206_v16 = vld [vmem:[%s3814_s11] sm:$0xff] }
0x268e   :  { %v1876_v20 = vadd.f32 %v1874_v19, %v3677_v42  ;;  %v2207_v19 = vld [vmem:[%s3814_s11 + $0x8] sm:$0xff] }
0x268f   :  { %v2878_v61 = vpack.c.bf16 %v2207_v19, %v2206_v16 }
0x2690   :  { %3011 = vtanh.f32 %v1876_v20  ;;  %v2426_v22 = vmul.f32 -1.442695, %v1876_v20 }
0x2692   :  { %3013 = vpow2.f32 %v2426_v22 }
0x269a   :  { %v3012_v21 = vpop.eup %3011 }
0x269b   :  { %1889 = vrot.lane.b32.xlu1 %v3012_v21, %s3281_s1 }
0x269c   :  { %v3014_v40 = vpop.eup %3013 }
0x269d   :  { %v1880_v25 = vadd.f32 1.0, %v3014_v40 }
0x269f   :  { %3015 = vrcp.f32 %v1880_v25  ;;  %v2208_v25 = vld [vmem:[%s3814_s11 + $0x10] sm:$0xff] }
0x26a9   :  { %v3016_v26 = vpop.eup %3015 }
0x26aa   :  { %v1887_v18 = vmul.f32 %v3016_v26, %v1885_v30 }
0x270d   :  { %v1890_v27 = vpop.permute.xlu1 %1889 }
0x270e   :  { %v1892_v28 = vmul.f32 %v3016_v26, %v1890_v27  ;;  %v2431_v27 = vld [vmem:[#allocation15] ss:$0 sm:$0xff] }
0x2710   :  { %1894 = vrot.lane.b32.xlu0 %v1892_v28, %s3282_s18 }
0x2782   :  { %v1895_v29 = vpop.permute.xlu0 %1894 }
0x2783   :  { %v1897_v31 = vadd.f32 %v1895_v29, %v1887_v18 }
0x2785   :  { %3017 = vtanh.f32 %v1897_v31  ;;  %v1992_v52 = vrot.slane %v1897_v31, 6  ;;  %v2292_v31 = vld [vmem:[%s3816_s13 + $0x8] sm:$0xff] }
0x278f   :  { %v3018_v32 = vpop.eup %3017 }
0x2790   :  { %1900 = vrot.lane.b32.xlu1 %v3018_v32, %s3281_s1 }
0x2802   :  { %v1901_v23 = vpop.permute.xlu1 %1900 }
0x2803   :  { %v1903_v33 = vmul.f32 %v3016_v26, %v1901_v23  ;;  %v2209_v26 = vld [vmem:[%s3814_s11 + $0x18] sm:$0xff] }
0x2804   :  { %v2433_v23 = vld [vmem:[#allocation17] ss:$0 sm:$0xff] }
0x2805   :  { %v1905_v34 = vrot.slane %v1903_v33, 2 }
0x2807   :  { %1906 = vrot.lane.b32.xlu0 %v1905_v34, %s3282_s18 }
0x2879   :  { %v1907_v35 = vpop.permute.xlu0 %1906 }
0x287a   :  { %2721 = vmatmul.mubr.msk.f32.vlgmr.msra.gmra.mrb[16].mxu0 %vm305_vm3, %v1907_v35 }
0x287b   :  { %2742 = vmatprep.mubr.msk.f32.mxu0 %vm3279_vm1, %v3280_v24 }
0x294d   :  { %v1976_v36 = vpop.f32.mrb[16].mxu0 }
0x294e   :  { %v1981_v37 = vrot.slane %v1976_v36, 4  ;;  %v2722_v38 = vpop.f32.mrb[17].mxu0 }
0x2950   :  { %v1983_v39 = vadd.f32 %v1981_v37, %v3677_v42  ;;  %v2435_v37 = vld [vmem:[%s3817_s14] ss:$0 sm:$0xff] }
0x2952   :  { %3019 = vtanh.f32 %v1983_v39  ;;  %v2428_v43 = vmul.f32 -1.442695, %v1983_v39 }
0x2954   :  { %3021 = vpow2.f32 %v2428_v43 }
0x295c   :  { %v3020_v41 = vpop.eup %3019 }
0x295d   :  { %1996 = vrot.lane.b32.xlu1 %v3020_v41, %s3281_s1 }
0x295e   :  { %v3022_v46 = vpop.eup %3021 }
0x295f   :  { %v1987_v48 = vadd.f32 1.0, %v3022_v46 }
0x2961   :  { %3023 = vrcp.f32 %v1987_v48 }
0x296b   :  { %v3024_v49 = vpop.eup %3023 }
0x296c   :  { %v1994_v53 = vmul.f32 %v3024_v49, %v1992_v52 }
0x29cf   :  { %v1997_v50 = vpop.permute.xlu1 %1996 }
0x29d0   :  { %v1999_v51 = vmul.f32 %v3024_v49, %v1997_v50 }
0x29d2   :  { %2001 = vrot.lane.b32.xlu0 %v1999_v51, %s3282_s18 }
0x2a44   :  { %v2002_v54 = vpop.permute.xlu0 %2001 }
0x2a45   :  { %v2004_v55 = vadd.f32 %v2002_v54, %v1994_v53 }
0x2a47   :  { %3025 = vtanh.f32 %v2004_v55  ;;  %v2099_v7 = vrot.slane %v2004_v55, 6 }
0x2a51   :  { %v3026_v56 = vpop.eup %3025 }
0x2a52   :  { %2007 = vrot.lane.b32.xlu1 %v3026_v56, %s3281_s1 }
0x2ac4   :  { %v2008_v57 = vpop.permute.xlu1 %2007 }
0x2ac5   :  { %v2010_v58 = vmul.f32 %v3024_v49, %v2008_v57 }
0x2ac7   :  { %v2012_v44 = vrot.slane %v2010_v58, 4 }
0x2ac9   :  { %2013 = vrot.lane.b32.xlu0 %v2012_v44, %s3282_s18 }
0x2b3b   :  { %v2014_v59 = vpop.permute.xlu0 %2013 }
0x2b3c   :  { %2732 = vmatmul.mubr.msk.f32.vlgmr.msra.gmra.mrb[16].mxu1 %vm305_vm3, %v2014_v59 }
0x2b3d   :  { %2753 = vmatprep.mubr.msk.f32.mxu1 %vm3279_vm1, %v3280_v24  ;;  %2879 = vmatpush3.bf16.msra.mxu1 %v2878_v61 }
0x2b3e   :  { %2880 = vmatprep.subr.bf16.mxu1 %v3278_v17 }
0x2c0f   :  { %v2083_v47 = vpop.f32.mrb[16].mxu1 }
0x2c10   :  { %v2088_v60 = vrot.slane %v2083_v47, 2  ;;  %v2733_v62 = vpop.f32.mrb[17].mxu1 }
0x2c12   :  { %v2090_v63 = vadd.f32 %v2088_v60, %v3677_v42  ;;  %v2118_v42 = vld [vmem:[#allocation14] sm:$0xff] }
0x2c13   :  { %v2872_v12 = vpack.c.bf16 %v2119_v45, %v2118_v42 }
0x2c14   :  { %3027 = vtanh.f32 %v2090_v63  ;;  %v2430_v1 = vmul.f32 -1.442695, %v2090_v63 }
0x2c15   :  { %2873 = vmatpush3.bf16.msra.mxu0 %v2872_v12 }
0x2c16   :  { %3029 = vpow2.f32 %v2430_v1  ;;  %2874 = vmatprep.subr.bf16.mxu0 %v3278_v17 }
0x2c19   :  { %2876 = vmatpush3.bf16.msra.mxu0 %v2875_v14 }
0x2c1a   :  { %2883 = vmatprep.subr.bf16.mxu0 %v3278_v17  ;;  %v2881_v17 = vpack.c.bf16 %v2209_v26, %v2208_v25 }
0x2c1c   :  { %2882 = vmatpush3.bf16.msra.mxu1 %v2881_v17 }
0x2c1e   :  { %v3028_v0 = vpop.eup %3027 }
0x2c1f   :  { %2103 = vrot.lane.b32.xlu1 %v3028_v0, %s3281_s1 }
0x2c20   :  { %v3030_v2 = vpop.eup %3029 }
0x2c21   :  { %v2094_v3 = vadd.f32 1.0, %v3030_v2 }
0x2c23   :  { %3031 = vrcp.f32 %v2094_v3 }
0x2c2d   :  { %v3032_v4 = vpop.eup %3031 }
0x2c2e   :  { %v2101_v8 = vmul.f32 %v3032_v4, %v2099_v7 }
0x2c91   :  { %v2104_v5 = vpop.permute.xlu1 %2103 }
0x2c92   :  { %v2106_v6 = vmul.f32 %v3032_v4, %v2104_v5 }
0x2c94   :  { %2108 = vrot.lane.b32.xlu0 %v2106_v6, %s3282_s18 }
0x2d06   :  { %v2109_v9 = vpop.permute.xlu0 %2108 }
0x2d07   :  { %v2111_v10 = vadd.f32 %v2109_v9, %v2101_v8 }
0x2d09   :  { %3033 = vtanh.f32 %v2111_v10 }
0x2d13   :  { %v3034_v15 = vpop.eup %3033 }
0x2d14   :  { %2114 = vrot.lane.b32.xlu1 %v3034_v15, %s3281_s1 }
0x2d86   :  { %v2115_v20 = vpop.permute.xlu1 %2114 }
0x2d87   :  { %v2117_v21 = vmul.f32 %v3032_v4, %v2115_v20 }
0x2d89   :  { %v2130_v22 = vrot.slane %v2117_v21, 6 }
0x2d8b   :  { %2131 = vrot.lane.b32.xlu0 %v2130_v22, %s3282_s18 }
0x2dfd   :  { %v2132_v40 = vpop.permute.xlu0 %2131 }
0x2dfe   :  { %2743 = vmatmul.mubr.msk.f32.vlgmr.msra.gmra.mrb[18].mxu0 %vm305_vm3, %v2132_v40 }
0x2dff   :  { %2760 = vmatprep.mubr.msk.f32.mxu0 %vm3279_vm1, %v3280_v24  ;;  %v2291_v24 = vld [vmem:[%s3816_s13] sm:$0xff]  ;;  %s3233_s13 = scalar_lea.vmem %s2381_s29, 32 }
0x2e00   :  { %v2884_v32 = vpack.c.bf16 %v2292_v31, %v2291_v24  ;;  %p3234_p2 = scmp.ne.s32.totalorder %s2381_s29, %s3233_s13  ;;  %p3239_p4 = scmp.lt.s32.totalorder %s3233_s13, %s3233_s13 }
0x2e02   :  { %2885 = vmatpush3.bf16.msra.mxu0 %v2884_v32  ;;  %p3240_p5 = por %p3239_p4, %p3238_p3 }
0x2e04   :  { %p3241_p6 = pnand %p3240_p5, %p3234_p2 }
0x2ed1   :  { %v2201_v28 = vpop.f32.mrb[18].mxu0 }
0x2ed2   :  { %v2202_v30 = vadd.f32 %v2431_v27, %v2201_v28  ;;  %v2744_v18 = vpop.f32.mrb[19].mxu0 }
0x2ed4   :  { %v2205_v29 = vmax.f32 %v2202_v30, 0.0 }
0x2ed6   :  { %2754 = vmatmul.mubr.msk.f32.vlgmr.msra.gmra.mrb[18].mxu1 %vm305_vm3, %v2205_v29 }
0x2fa9   :  { %v2286_v33 = vpop.f32.mrb[18].mxu1 }
0x2faa   :  { %v2287_v34 = vadd.f32 %v2433_v23, %v2286_v33  ;;  %v2755_v35 = vpop.f32.mrb[19].mxu1 }
0x2fac   :  { %v2290_v36 = vmax.f32 %v2287_v34, 0.0 }
0x2fae   :  { %2761 = vmatmul.mubr.msk.f32.vlgmr.msra.gmra.mrb[20].mxu0 %vm165_vm0, %v2290_v36 }
0x3081   :  { %v2369_v38 = vpop.f32.mrb[20].mxu0 }
0x3082   :  { %v2370_v39 = vadd.f32 %v2435_v37, %v2369_v38  ;;  %v2762_v41 = vpop.f32.mrb[21].mxu0 }
0x3084   :  { %2373 = vst [vmem:[#allocation18] sm:$0x3] %v2370_v39 }
0x3085   :  { %3244 = shalt.err (!%p3241_p6)
}
0x3086   :  { %s3245_s1 = scalar_lea.hbm %s3818_s15, 32 }
0x3087   :  { %p3246_p7 = scmp.ne.s32.totalorder %s3818_s15, %s3245_s1  ;;  %p3249_p8 = scmp.lt.u32.totalorder %s3245_s1, %s3818_s15 }
0x3089   :  { %p3251_p9 = pnand %p3249_p8, %p3246_p7 }
0x308b   :  { %3254 = shalt.err (!%p3251_p9)
}
0x308c   :  { %2383 = dma.vmem_to_hbm [thread:$0]  %s2381_s29, 32, %s3818_s15, [#allocation5]  }
0x308d   :  { %3265 = dma.done.wait [#allocation5], 32  }
0x308e   :  { %3266 = vsyncadd [#allocation5], 4294967264 }
0x308f   :  { %2387 = vsyncpa [#allocation4], 1 }
0x3090   :  { %2388 = vsyncpa [#allocation7], 1 }
0x3091   :  { %2389 = vsyncpa [#allocation10], 1 }
0x3092   :  { %2390 = vsyncpa [#allocation13], 1 }
0x3093   :  { %2391 = vsyncpa [#allocation16], 1 }
0x3094   :  { %2392 = vsyncpa [#allocation5], 1 }

</bundles_post_ra>
